<compile_context>
chip_gen: v6e
topology: v6e:2x2x1
jax: 0.10.0
libtpu: 0.0.40
codegen_flags: <defaults>
</compile_context>

<pallas_src>
import functools
import math

import jax
import jax.numpy as jnp
from jax.experimental import pallas as pl
from jax.experimental.pallas import tpu as pltpu

# ----------------------------- config ---------------------------------------
CONFIG = dict(
    input_size=4,
    hidden_size=32,
    num_layers=1,
    num_heads=4,
    output_size=4,
    dropout_1=0.0,
    dropout_2=0.0,
)
BATCH = 2
SEQ = 8


# ----------------------------- kernel ---------------------------------------
def gru_attention_kernel(
    x_ref,      # (T*B, I)  bf16  time-major flattened input (row = t*B + b)
    wb_ref,     # (Rb, L)   bf16  packed weight slab
    pf_ref,     # (Rf, L)   f32   packed slab: w_hh (recurrence) + biases
    o_ref,      # (B, O)    f32   output
    seq_ref,    # scratch (T*B, H) f32 GRU outputs, stored reverse-time
    *,
    seq_len: int,
    batch: int,
    hidden: int,
    num_heads: int,
    out_dim: int,
    o_wih: int, o_wqkv: int, o_seg: int, o_segt: int, o_wfold: int,
    o_sel: int, o_selt: int, o_whh: int, o_bias: int,
):
    f32, bf16 = jnp.float32, jnp.bfloat16
    T, B, H, NH, O = seq_len, batch, hidden, num_heads, out_dim
    TB, H3 = T * B, 3 * hidden
    I = x_ref.shape[1]

    # ---- unpack parameter slabs (static ref slices, no relayout) ----
    w_ih   = wb_ref[o_wih:o_wih + I, 0:H3]        # (I, 3H)  bf16, gates r|z|n on lanes
    w_qkv  = wb_ref[o_wqkv:o_wqkv + H, 0:H3]      # (H, 3H)  bf16, q|k|v on lanes (q pre-scaled)
    seg    = wb_ref[o_seg:o_seg + H, 0:NH]        # (H, NH)  block-diag head segments
    seg_t  = wb_ref[o_segt:o_segt + NH, 0:H]      # (NH, H)
    w_fold = wb_ref[o_wfold:o_wfold + H, 0:O]     # (H, O)   out_proj folded into Linear
    sel    = wb_ref[o_sel:o_sel + B, 0:TB]        # (B, TB)  per-batch time-sum selector
    sel_t  = wb_ref[o_selt:o_selt + TB, 0:B]      # (TB, B)  query replicator

    w_hh   = pf_ref[o_whh:o_whh + H, 0:H3]        # (H, 3H)  f32 (recurrence stays f32)
    b_ih   = pf_ref[o_bias + 0:o_bias + 1, 0:H3]  # (1, 3H)
    b_hh   = pf_ref[o_bias + 1:o_bias + 2, 0:H3]
    b_qkv  = pf_ref[o_bias + 2:o_bias + 3, 0:H3]
    b_fold = pf_ref[o_bias + 3:o_bias + 4, 0:O]

    # ---------------- GRU: gates fused on the lane axis ----------------
    # One input-side matmul for all timesteps and gates (bf16 operands).
    gi = jnp.dot(x_ref[...], w_ih, preferred_element_type=f32) + b_ih    # (TB, 3H)

    h = jnp.zeros((B, H), f32)
    for t in range(T):  # static unroll: T is small, LLO scheduler sees everything
        gi_t = gi[t * B:(t + 1) * B, :]                                  # (B, 3H)
        # Recurrent matmul kept in f32 (error does not compound over T steps).
        gh = jnp.dot(h, w_hh, preferred_element_type=f32) + b_hh         # (B, 3H)
        r = jax.nn.sigmoid(gi_t[:, 0:H] + gh[:, 0:H])
        z = jax.nn.sigmoid(gi_t[:, H:2 * H] + gh[:, H:2 * H])
        n = jnp.tanh(gi_t[:, 2 * H:H3] + r * gh[:, 2 * H:H3])
        h = (1.0 - z) * n + z * h
        # Reverse-time store: the LAST timestep ends up in rows 0:B, so the
        # query slice below is an offset-0 slice; attention is permutation-
        # invariant over keys so the row order of k/v does not matter.
        seq_ref[(T - 1 - t) * B:(T - t) * B, :] = h

    seq_flat = seq_ref[...]                                              # (TB, H) f32

    # ------------- MultiheadAttention: last query only -------------
    # Fused q|k|v projection; 1/sqrt(head_dim) is folded into the q columns.
    qkv = jnp.dot(seq_flat.astype(bf16), w_qkv, preferred_element_type=f32) + b_qkv
    q_last = qkv[0:B, 0:H]                                               # (B, H)
    k = qkv[:, H:2 * H]                                                  # (TB, H)
    v = qkv[:, 2 * H:H3]                                                 # (TB, H)

    # Replicate the last-step query across all TB rows with one tiny MXU push
    # (avoids any (T,B,H) broadcast/reshape relayout).
    q_rows = jnp.dot(sel_t, q_last.astype(bf16), preferred_element_type=f32)   # (TB, H)

    # Per-head scores of the final query against every timestep, all heads at
    # once: segmented lane reduction as a single (TB,H) @ (H,NH) matmul.
    scores = jnp.dot((q_rows * k).astype(bf16), seg,
                     preferred_element_type=f32)                          # (TB, NH)

    # Softmax over time. softmax is shift-invariant, so subtracting the single
    # global max is exact and numerically safe — no per-(b,head) broadcast of
    # the max back over time rows is needed.
    m = jnp.max(jnp.max(scores, axis=1, keepdims=True), axis=0, keepdims=True)
    e = jnp.exp(scores - m)                                               # (TB, NH)

    # Unnormalized per-head weights expanded to H lanes (MXU), times v.
    ew = jnp.dot(e.astype(bf16), seg_t, preferred_element_type=f32) * v   # (TB, H)
    # Per-batch sums over time as MXU contractions against the 0/1 selector.
    ctx_u = jnp.dot(sel, ew.astype(bf16), preferred_element_type=f32)     # (B, H)
    denom = jnp.dot(sel, e.astype(bf16), preferred_element_type=f32)      # (B, NH)
    inv_h = jnp.dot(pl.reciprocal(denom, approx=False).astype(bf16), seg_t,
                    preferred_element_type=f32)                           # (B, H)
    ctx = ctx_u * inv_h                                                   # (B, H)

    # out_proj folded into the Linear head host-side (exact: dropout_2 identity).
    yhat = jnp.dot(ctx.astype(bf16), w_fold, preferred_element_type=f32) + b_fold
    o_ref[...] = yhat.astype(o_ref.dtype)


# ----------------------------- host-side packing -----------------------------
def _pack_slab(arrays, lane_width, dtype, row_align):
    """Concatenate 2-D arrays along the sublane axis into one (rows, lane_width)
    slab; each section is padded to `row_align` rows. Returns (slab, offsets)."""
    parts, offsets, off = [], [], 0
    for a in arrays:
        a = jnp.asarray(a, dtype)
        r, c = a.shape
        rp = ((r + row_align - 1) // row_align) * row_align
        buf = jnp.zeros((rp, lane_width), dtype).at[:r, :c].set(a)
        parts.append(buf)
        offsets.append(off)
        off += rp
    return jnp.concatenate(parts, axis=0), offsets


def prepare_params(p, *, num_heads, seq_len, batch):
    """Host-side layout plumbing: transpose / gate- & chunk-fuse / fold weights,
    build the 0/1 selector matrices, and pack everything into one bf16 slab +
    one f32 slab (2 prologue DMAs instead of 11)."""
    f32, bf16 = jnp.float32, jnp.bfloat16
    H = p['w_hh'].shape[1]
    O = p['lin_w'].shape[0]
    hd = H // num_heads
    TB = seq_len * batch
    H3 = 3 * H
    L = max(H3, TB)

    # GRU weights: PyTorch stacks gates r|z|n along rows -> transpose to lanes.
    w_ih_pack = p['w_ih'].T                                   # (I, 3H)
    w_hh_pack = p['w_hh'].T                                   # (H, 3H)

    # MHA in_proj: chunk order q|k|v; fold 1/sqrt(head_dim) into the q chunk.
    scale = 1.0 / math.sqrt(hd)
    w_q, w_k, w_v = jnp.split(p['in_proj_w'], 3, axis=0)
    w_qkv = jnp.concatenate([w_q.T * scale, w_k.T, w_v.T], axis=1)    # (H, 3H)
    b_q, b_k, b_v = jnp.split(p['in_proj_b'].reshape(-1), 3)
    b_qkv = jnp.concatenate([b_q * scale, b_k, b_v])                  # (3H,)

    # Fold attention out_proj into the final Linear (exact in eval mode).
    w_fold = p['out_proj_w'].T @ p['lin_w'].T                         # (H, O)
    b_fold = (p['out_proj_b'] @ p['lin_w'].T + p['lin_b']).reshape(-1)  # (O,)

    # Block-diagonal head-segment matrices and per-batch selectors.
    seg = (jnp.arange(H)[:, None] // hd
           == jnp.arange(num_heads)[None, :]).astype(f32)             # (H, NH)
    seg_t = seg.T                                                     # (NH, H)
    sel = (jnp.arange(TB)[None, :] % batch
           == jnp.arange(batch)[:, None]).astype(f32)                 # (B, TB)
    sel_t = sel.T                                                     # (TB, B)

    wb, wb_off = _pack_slab(
        [w_ih_pack, w_qkv, seg, seg_t, w_fold, sel, sel_t],
        lane_width=L, dtype=bf16, row_align=16)

    biases = jnp.zeros((4, L), f32)
    biases = biases.at[0, :H3].set(p['b_ih'].reshape(-1))
    biases = biases.at[1, :H3].set(p['b_hh'].reshape(-1))
    biases = biases.at[2, :H3].set(b_qkv)
    biases = biases.at[3, :O].set(b_fold)

    pf, pf_off = _pack_slab([w_hh_pack, biases],
                            lane_width=L, dtype=f32, row_align=8)

    offs = dict(o_wih=wb_off[0], o_wqkv=wb_off[1], o_seg=wb_off[2],
                o_segt=wb_off[3], o_wfold=wb_off[4], o_sel=wb_off[5],
                o_selt=wb_off[6], o_whh=pf_off[0], o_bias=pf_off[1])
    return wb, pf, offs


# ----------------------------- wrapper ---------------------------------------
def gru_attention_forward(x, params, *, num_heads):
    B, T, _I = x.shape
    H = params['w_hh'].shape[1]
    O = params['lin_w'].shape[0]
    wb, pf, offs = prepare_params(params, num_heads=num_heads, seq_len=T, batch=B)
    # Time-major flatten (row = t*B + b); bf16 operands for the input-side matmul.
    x_flat = jnp.transpose(x, (1, 0, 2)).reshape(T * B, _I).astype(jnp.bfloat16)

    kernel = functools.partial(
        gru_attention_kernel, seq_len=T, batch=B, hidden=H,
        num_heads=num_heads, out_dim=O, **offs)

    vmem = lambda: pl.BlockSpec(memory_space=pltpu.MemorySpace.VMEM)
    # A single (B=2, T=8) problem is one tiny block -> grid-less call.  For many
    # sequences per call, add a leading batch-block grid axis and
    # compiler_params=pltpu.CompilerParams(dimension_semantics=("parallel",))
    # so the blocks shard across v7x's two TensorCores / fill the MXU on v6e.
    return pl.pallas_call(
        kernel,
        out_shape=jax.ShapeDtypeStruct((B, O), jnp.float32),
        in_specs=[vmem(), vmem(), vmem()],
        out_specs=vmem(),
        scratch_shapes=[pltpu.VMEM((T * B, H), jnp.float32)],
    )(x_flat, wb, pf)


# ----------------------------- params ----------------------------------------
def init_params(key, cfg):
    I, H, O = cfg['input_size'], cfg['hidden_size'], cfg['output_size']
    ks = jax.random.split(key, 12)
    u = lambda k, shape, bound: jax.random.uniform(
        k, shape, jnp.float32, minval=-bound, maxval=bound)
    kg = 1.0 / math.sqrt(H)
    ka = 1.0 / math.sqrt(H)
    kl = 1.0 / math.sqrt(H)
    return dict(
        # GRU layer 0 (PyTorch layout, gate order r|z|n)
        w_ih=u(ks[0], (3 * H, I), kg),
        w_hh=u(ks[1], (3 * H, H), kg),
        b_ih=u(ks[2], (1, 3 * H), kg),
        b_hh=u(ks[3], (1, 3 * H), kg),
        # MultiheadAttention (PyTorch layout, chunk order q|k|v)
        in_proj_w=u(ks[4], (3 * H, H), ka),
        in_proj_b=u(ks[5], (1, 3 * H), ka),
        out_proj_w=u(ks[6], (H, H), ka),
        out_proj_b=u(ks[7], (1, H), ka),
        # Linear
        lin_w=u(ks[8], (O, H), kl),
        lin_b=u(ks[9], (1, O), kl),
    )


# ----------------------------- reference (plain JAX, f32) ---------------------
def reference_forward(x, p, *, num_heads):
    B, T, I = x.shape
    H = p['w_hh'].shape[1]
    gi_all = x.reshape(B * T, I) @ p['w_ih'].T + p['b_ih']
    gi_all = gi_all.reshape(B, T, 3 * H)
    h = jnp.zeros((B, H), jnp.float32)
    hs = []
    for t in range(T):
        gi = gi_all[:, t, :]
        gh = h @ p['w_hh'].T + p['b_hh']
        r = jax.nn.sigmoid(gi[:, :H] + gh[:, :H])
        z = jax.nn.sigmoid(gi[:, H:2 * H] + gh[:, H:2 * H])
        n = jnp.tanh(gi[:, 2 * H:] + r * gh[:, 2 * H:])
        h = (1 - z) * n + z * h
        hs.append(h)
    seq = jnp.stack(hs, axis=1)
    qkv = seq.reshape(B * T, H) @ p['in_proj_w'].T + p['in_proj_b']
    q, k, v = (qkv[:, :H].reshape(B, T, H),
               qkv[:, H:2 * H].reshape(B, T, H),
               qkv[:, 2 * H:].reshape(B, T, H))
    hd = H // num_heads
    q = q.reshape(B, T, num_heads, hd)
    k = k.reshape(B, T, num_heads, hd)
    v = v.reshape(B, T, num_heads, hd)
    scores = jnp.einsum('bqhd,bkhd->bhqk', q / math.sqrt(hd), k)
    probs = jax.nn.softmax(scores, axis=-1)
    ctx = jnp.einsum('bhqk,bkhd->bqhd', probs, v).reshape(B, T, H)
    attn_out = (ctx.reshape(B * T, H) @ p['out_proj_w'].T + p['out_proj_b']).reshape(B, T, H)
    last = attn_out[:, -1, :]
    return last @ p['lin_w'].T + p['lin_b']


# ----------------------------- main -------------------------------------------
if __name__ == "__main__":
    key = jax.random.PRNGKey(0)
    k_x, k_p = jax.random.split(key)
    x = jax.random.normal(k_x, (BATCH, SEQ, CONFIG['input_size']), jnp.float32)
    params = init_params(k_p, CONFIG)

    out = gru_attention_forward(x, params, num_heads=CONFIG['num_heads'])
    out = jax.block_until_ready(out)

    ref = reference_forward(x, params, num_heads=CONFIG['num_heads'])
    assert out.shape == (BATCH, CONFIG['output_size'])
    # Tolerance accounts for bf16 MXU operands on the non-recurrent matmuls
    # (per perf review); the GRU recurrence itself stays in f32.
    assert jnp.allclose(out, ref, atol=5e-3, rtol=5e-3), (out, ref)

    print("KERNEL_OK")
</pallas_src>

<mosaic_0001>
module attributes {stable_mosaic.version = 11 : i64} {
  func.func @gru_attention_kernel(%arg0: memref<16x4xbf16, #tpu.memory_space<vmem>>, %arg1: memref<160x96xbf16, #tpu.memory_space<vmem>>, %arg2: memref<40x96xf32, #tpu.memory_space<vmem>>, %arg3: memref<2x4xf32, #tpu.memory_space<vmem>>, %arg4: memref<16x32xf32, #tpu.memory_space<vmem>>) attributes {dimension_semantics = [], scalar_prefetch = 0 : i64, scratch_operands = 1 : i64, tpu.core_type = #tpu.core_type<tc>} {
    %c0 = arith.constant 0 : index
    %c0_0 = arith.constant 0 : index
    %0 = vector.load %arg1[%c0, %c0_0] : memref<160x96xbf16, #tpu.memory_space<vmem>>, vector<4x96xbf16>
    %c16 = arith.constant 16 : index
    %c0_1 = arith.constant 0 : index
    %1 = vector.load %arg1[%c16, %c0_1] : memref<160x96xbf16, #tpu.memory_space<vmem>>, vector<32x96xbf16>
    %c48 = arith.constant 48 : index
    %c0_2 = arith.constant 0 : index
    %2 = vector.load %arg1[%c48, %c0_2] : memref<160x96xbf16, #tpu.memory_space<vmem>>, vector<32x4xbf16>
    %c80 = arith.constant 80 : index
    %c0_3 = arith.constant 0 : index
    %3 = vector.load %arg1[%c80, %c0_3] : memref<160x96xbf16, #tpu.memory_space<vmem>>, vector<4x32xbf16>
    %c96 = arith.constant 96 : index
    %c0_4 = arith.constant 0 : index
    %4 = vector.load %arg1[%c96, %c0_4] : memref<160x96xbf16, #tpu.memory_space<vmem>>, vector<32x4xbf16>
    %c128 = arith.constant 128 : index
    %c0_5 = arith.constant 0 : index
    %5 = vector.load %arg1[%c128, %c0_5] : memref<160x96xbf16, #tpu.memory_space<vmem>>, vector<2x16xbf16>
    %c144 = arith.constant 144 : index
    %c0_6 = arith.constant 0 : index
    %6 = vector.load %arg1[%c144, %c0_6] : memref<160x96xbf16, #tpu.memory_space<vmem>>, vector<16x2xbf16>
    %c0_7 = arith.constant 0 : index
    %c0_8 = arith.constant 0 : index
    %7 = vector.load %arg2[%c0_7, %c0_8] : memref<40x96xf32, #tpu.memory_space<vmem>>, vector<32x96xf32>
    %c32 = arith.constant 32 : index
    %c0_9 = arith.constant 0 : index
    %8 = vector.load %arg2[%c32, %c0_9] : memref<40x96xf32, #tpu.memory_space<vmem>>, vector<1x96xf32>
    %c33 = arith.constant 33 : index
    %c0_10 = arith.constant 0 : index
    %9 = vector.load %arg2[%c33, %c0_10] : memref<40x96xf32, #tpu.memory_space<vmem>>, vector<1x96xf32>
    %c34 = arith.constant 34 : index
    %c0_11 = arith.constant 0 : index
    %10 = vector.load %arg2[%c34, %c0_11] : memref<40x96xf32, #tpu.memory_space<vmem>>, vector<1x96xf32>
    %c35 = arith.constant 35 : index
    %c0_12 = arith.constant 0 : index
    %11 = vector.load %arg2[%c35, %c0_12] : memref<40x96xf32, #tpu.memory_space<vmem>>, vector<1x4xf32>
    %c0_13 = arith.constant 0 : index
    %c0_14 = arith.constant 0 : index
    %12 = vector.load %arg0[%c0_13, %c0_14] : memref<16x4xbf16, #tpu.memory_space<vmem>>, vector<16x4xbf16>
    %cst = arith.constant dense<0.000000e+00> : vector<16x96xf32>
    %13 = tpu.matmul %12, %0, %cst {dimension_numbers = #tpu.dot_dimension_numbers<[1], [0], [0], [1], [0, 0, 1, 1], [], []>} : vector<16x4xbf16>, vector<4x96xbf16>, vector<16x96xf32> -> vector<16x96xf32>
    %14 = vector.broadcast %8 : vector<1x96xf32> to vector<16x96xf32>
    %15 = arith.addf %13, %14 : vector<16x96xf32>
    %cst_15 = arith.constant 0.000000e+00 : f32
    %16 = vector.broadcast %cst_15 : f32 to vector<2x32xf32>
    %17 = vector.extract_strided_slice %15 {offsets = [0, 0], sizes = [2, 96], strides = [1, 1]} : vector<16x96xf32> to vector<2x96xf32>
    %cst_16 = arith.constant dense<0.000000e+00> : vector<2x96xf32>
    %18 = tpu.matmul %16, %7, %cst_16 {dimension_numbers = #tpu.dot_dimension_numbers<[1], [0], [0], [1], [0, 0, 1, 1], [], []>} : vector<2x32xf32>, vector<32x96xf32>, vector<2x96xf32> -> vector<2x96xf32>
    %19 = vector.broadcast %9 : vector<1x96xf32> to vector<2x96xf32>
    %20 = arith.addf %18, %19 : vector<2x96xf32>
    %21 = vector.extract_strided_slice %17 {offsets = [0, 0], sizes = [2, 32], strides = [1, 1]} : vector<2x96xf32> to vector<2x32xf32>
    %22 = vector.extract_strided_slice %20 {offsets = [0, 0], sizes = [2, 32], strides = [1, 1]} : vector<2x96xf32> to vector<2x32xf32>
    %23 = arith.addf %21, %22 : vector<2x32xf32>
    %24 = arith.negf %23 : vector<2x32xf32>
    %25 = math.exp %24 : vector<2x32xf32>
    %cst_17 = arith.constant 1.000000e+00 : f32
    %26 = vector.broadcast %cst_17 : f32 to vector<2x32xf32>
    %27 = arith.addf %26, %25 : vector<2x32xf32>
    %28 = arith.divf %26, %27 : vector<2x32xf32>
    %29 = vector.extract_strided_slice %17 {offsets = [0, 32], sizes = [2, 32], strides = [1, 1]} : vector<2x96xf32> to vector<2x32xf32>
    %30 = vector.extract_strided_slice %20 {offsets = [0, 32], sizes = [2, 32], strides = [1, 1]} : vector<2x96xf32> to vector<2x32xf32>
    %31 = arith.addf %29, %30 : vector<2x32xf32>
    %32 = arith.negf %31 : vector<2x32xf32>
    %33 = math.exp %32 : vector<2x32xf32>
    %cst_18 = arith.constant 1.000000e+00 : f32
    %34 = vector.broadcast %cst_18 : f32 to vector<2x32xf32>
    %35 = arith.addf %34, %33 : vector<2x32xf32>
    %36 = arith.divf %34, %35 : vector<2x32xf32>
    %37 = vector.extract_strided_slice %17 {offsets = [0, 64], sizes = [2, 32], strides = [1, 1]} : vector<2x96xf32> to vector<2x32xf32>
    %38 = vector.extract_strided_slice %20 {offsets = [0, 64], sizes = [2, 32], strides = [1, 1]} : vector<2x96xf32> to vector<2x32xf32>
    %39 = arith.mulf %28, %38 : vector<2x32xf32>
    %40 = arith.addf %37, %39 : vector<2x32xf32>
    %41 = math.tanh %40 : vector<2x32xf32>
    %cst_19 = arith.constant 1.000000e+00 : f32
    %42 = vector.broadcast %cst_19 : f32 to vector<2x32xf32>
    %43 = arith.subf %42, %36 : vector<2x32xf32>
    %44 = arith.mulf %43, %41 : vector<2x32xf32>
    %45 = arith.mulf %36, %16 : vector<2x32xf32>
    %46 = arith.addf %44, %45 : vector<2x32xf32>
    %c14 = arith.constant 14 : index
    %c0_20 = arith.constant 0 : index
    %47 = vector.load %arg4[%c14, %c0_20] : memref<16x32xf32, #tpu.memory_space<vmem>>, vector<2x32xf32>
    tpu.vector_store %arg4[%c14, %c0_20], %46 {strides = array<i32>} : memref<16x32xf32, #tpu.memory_space<vmem>>, vector<2x32xf32>,
    %48 = vector.extract_strided_slice %15 {offsets = [2, 0], sizes = [2, 96], strides = [1, 1]} : vector<16x96xf32> to vector<2x96xf32>
    %cst_21 = arith.constant dense<0.000000e+00> : vector<2x96xf32>
    %49 = tpu.matmul %46, %7, %cst_21 {dimension_numbers = #tpu.dot_dimension_numbers<[1], [0], [0], [1], [0, 0, 1, 1], [], []>} : vector<2x32xf32>, vector<32x96xf32>, vector<2x96xf32> -> vector<2x96xf32>
    %50 = vector.broadcast %9 : vector<1x96xf32> to vector<2x96xf32>
    %51 = arith.addf %49, %50 : vector<2x96xf32>
    %52 = vector.extract_strided_slice %48 {offsets = [0, 0], sizes = [2, 32], strides = [1, 1]} : vector<2x96xf32> to vector<2x32xf32>
    %53 = vector.extract_strided_slice %51 {offsets = [0, 0], sizes = [2, 32], strides = [1, 1]} : vector<2x96xf32> to vector<2x32xf32>
    %54 = arith.addf %52, %53 : vector<2x32xf32>
    %55 = arith.negf %54 : vector<2x32xf32>
    %56 = math.exp %55 : vector<2x32xf32>
    %cst_22 = arith.constant 1.000000e+00 : f32
    %57 = vector.broadcast %cst_22 : f32 to vector<2x32xf32>
    %58 = arith.addf %57, %56 : vector<2x32xf32>
    %59 = arith.divf %57, %58 : vector<2x32xf32>
    %60 = vector.extract_strided_slice %48 {offsets = [0, 32], sizes = [2, 32], strides = [1, 1]} : vector<2x96xf32> to vector<2x32xf32>
    %61 = vector.extract_strided_slice %51 {offsets = [0, 32], sizes = [2, 32], strides = [1, 1]} : vector<2x96xf32> to vector<2x32xf32>
    %62 = arith.addf %60, %61 : vector<2x32xf32>
    %63 = arith.negf %62 : vector<2x32xf32>
    %64 = math.exp %63 : vector<2x32xf32>
    %cst_23 = arith.constant 1.000000e+00 : f32
    %65 = vector.broadcast %cst_23 : f32 to vector<2x32xf32>
    %66 = arith.addf %65, %64 : vector<2x32xf32>
    %67 = arith.divf %65, %66 : vector<2x32xf32>
    %68 = vector.extract_strided_slice %48 {offsets = [0, 64], sizes = [2, 32], strides = [1, 1]} : vector<2x96xf32> to vector<2x32xf32>
    %69 = vector.extract_strided_slice %51 {offsets = [0, 64], sizes = [2, 32], strides = [1, 1]} : vector<2x96xf32> to vector<2x32xf32>
    %70 = arith.mulf %59, %69 : vector<2x32xf32>
    %71 = arith.addf %68, %70 : vector<2x32xf32>
    %72 = math.tanh %71 : vector<2x32xf32>
    %cst_24 = arith.constant 1.000000e+00 : f32
    %73 = vector.broadcast %cst_24 : f32 to vector<2x32xf32>
    %74 = arith.subf %73, %67 : vector<2x32xf32>
    %75 = arith.mulf %74, %72 : vector<2x32xf32>
    %76 = arith.mulf %67, %46 : vector<2x32xf32>
    %77 = arith.addf %75, %76 : vector<2x32xf32>
    %c12 = arith.constant 12 : index
    %c0_25 = arith.constant 0 : index
    %78 = vector.load %arg4[%c12, %c0_25] : memref<16x32xf32, #tpu.memory_space<vmem>>, vector<2x32xf32>
    tpu.vector_store %arg4[%c12, %c0_25], %77 {strides = array<i32>} : memref<16x32xf32, #tpu.memory_space<vmem>>, vector<2x32xf32>,
    %79 = vector.extract_strided_slice %15 {offsets = [4, 0], sizes = [2, 96], strides = [1, 1]} : vector<16x96xf32> to vector<2x96xf32>
    %cst_26 = arith.constant dense<0.000000e+00> : vector<2x96xf32>
    %80 = tpu.matmul %77, %7, %cst_26 {dimension_numbers = #tpu.dot_dimension_numbers<[1], [0], [0], [1], [0, 0, 1, 1], [], []>} : vector<2x32xf32>, vector<32x96xf32>, vector<2x96xf32> -> vector<2x96xf32>
    %81 = vector.broadcast %9 : vector<1x96xf32> to vector<2x96xf32>
    %82 = arith.addf %80, %81 : vector<2x96xf32>
    %83 = vector.extract_strided_slice %79 {offsets = [0, 0], sizes = [2, 32], strides = [1, 1]} : vector<2x96xf32> to vector<2x32xf32>
    %84 = vector.extract_strided_slice %82 {offsets = [0, 0], sizes = [2, 32], strides = [1, 1]} : vector<2x96xf32> to vector<2x32xf32>
    %85 = arith.addf %83, %84 : vector<2x32xf32>
    %86 = arith.negf %85 : vector<2x32xf32>
    %87 = math.exp %86 : vector<2x32xf32>
    %cst_27 = arith.constant 1.000000e+00 : f32
    %88 = vector.broadcast %cst_27 : f32 to vector<2x32xf32>
    %89 = arith.addf %88, %87 : vector<2x32xf32>
    %90 = arith.divf %88, %89 : vector<2x32xf32>
    %91 = vector.extract_strided_slice %79 {offsets = [0, 32], sizes = [2, 32], strides = [1, 1]} : vector<2x96xf32> to vector<2x32xf32>
    %92 = vector.extract_strided_slice %82 {offsets = [0, 32], sizes = [2, 32], strides = [1, 1]} : vector<2x96xf32> to vector<2x32xf32>
    %93 = arith.addf %91, %92 : vector<2x32xf32>
    %94 = arith.negf %93 : vector<2x32xf32>
    %95 = math.exp %94 : vector<2x32xf32>
    %cst_28 = arith.constant 1.000000e+00 : f32
    %96 = vector.broadcast %cst_28 : f32 to vector<2x32xf32>
    %97 = arith.addf %96, %95 : vector<2x32xf32>
    %98 = arith.divf %96, %97 : vector<2x32xf32>
    %99 = vector.extract_strided_slice %79 {offsets = [0, 64], sizes = [2, 32], strides = [1, 1]} : vector<2x96xf32> to vector<2x32xf32>
    %100 = vector.extract_strided_slice %82 {offsets = [0, 64], sizes = [2, 32], strides = [1, 1]} : vector<2x96xf32> to vector<2x32xf32>
    %101 = arith.mulf %90, %100 : vector<2x32xf32>
    %102 = arith.addf %99, %101 : vector<2x32xf32>
    %103 = math.tanh %102 : vector<2x32xf32>
    %cst_29 = arith.constant 1.000000e+00 : f32
    %104 = vector.broadcast %cst_29 : f32 to vector<2x32xf32>
    %105 = arith.subf %104, %98 : vector<2x32xf32>
    %106 = arith.mulf %105, %103 : vector<2x32xf32>
    %107 = arith.mulf %98, %77 : vector<2x32xf32>
    %108 = arith.addf %106, %107 : vector<2x32xf32>
    %c10 = arith.constant 10 : index
    %c0_30 = arith.constant 0 : index
    %109 = vector.load %arg4[%c10, %c0_30] : memref<16x32xf32, #tpu.memory_space<vmem>>, vector<2x32xf32>
    tpu.vector_store %arg4[%c10, %c0_30], %108 {strides = array<i32>} : memref<16x32xf32, #tpu.memory_space<vmem>>, vector<2x32xf32>,
    %110 = vector.extract_strided_slice %15 {offsets = [6, 0], sizes = [2, 96], strides = [1, 1]} : vector<16x96xf32> to vector<2x96xf32>
    %cst_31 = arith.constant dense<0.000000e+00> : vector<2x96xf32>
    %111 = tpu.matmul %108, %7, %cst_31 {dimension_numbers = #tpu.dot_dimension_numbers<[1], [0], [0], [1], [0, 0, 1, 1], [], []>} : vector<2x32xf32>, vector<32x96xf32>, vector<2x96xf32> -> vector<2x96xf32>
    %112 = vector.broadcast %9 : vector<1x96xf32> to vector<2x96xf32>
    %113 = arith.addf %111, %112 : vector<2x96xf32>
    %114 = vector.extract_strided_slice %110 {offsets = [0, 0], sizes = [2, 32], strides = [1, 1]} : vector<2x96xf32> to vector<2x32xf32>
    %115 = vector.extract_strided_slice %113 {offsets = [0, 0], sizes = [2, 32], strides = [1, 1]} : vector<2x96xf32> to vector<2x32xf32>
    %116 = arith.addf %114, %115 : vector<2x32xf32>
    %117 = arith.negf %116 : vector<2x32xf32>
    %118 = math.exp %117 : vector<2x32xf32>
    %cst_32 = arith.constant 1.000000e+00 : f32
    %119 = vector.broadcast %cst_32 : f32 to vector<2x32xf32>
    %120 = arith.addf %119, %118 : vector<2x32xf32>
    %121 = arith.divf %119, %120 : vector<2x32xf32>
    %122 = vector.extract_strided_slice %110 {offsets = [0, 32], sizes = [2, 32], strides = [1, 1]} : vector<2x96xf32> to vector<2x32xf32>
    %123 = vector.extract_strided_slice %113 {offsets = [0, 32], sizes = [2, 32], strides = [1, 1]} : vector<2x96xf32> to vector<2x32xf32>
    %124 = arith.addf %122, %123 : vector<2x32xf32>
    %125 = arith.negf %124 : vector<2x32xf32>
    %126 = math.exp %125 : vector<2x32xf32>
    %cst_33 = arith.constant 1.000000e+00 : f32
    %127 = vector.broadcast %cst_33 : f32 to vector<2x32xf32>
    %128 = arith.addf %127, %126 : vector<2x32xf32>
    %129 = arith.divf %127, %128 : vector<2x32xf32>
    %130 = vector.extract_strided_slice %110 {offsets = [0, 64], sizes = [2, 32], strides = [1, 1]} : vector<2x96xf32> to vector<2x32xf32>
    %131 = vector.extract_strided_slice %113 {offsets = [0, 64], sizes = [2, 32], strides = [1, 1]} : vector<2x96xf32> to vector<2x32xf32>
    %132 = arith.mulf %121, %131 : vector<2x32xf32>
    %133 = arith.addf %130, %132 : vector<2x32xf32>
    %134 = math.tanh %133 : vector<2x32xf32>
    %cst_34 = arith.constant 1.000000e+00 : f32
    %135 = vector.broadcast %cst_34 : f32 to vector<2x32xf32>
    %136 = arith.subf %135, %129 : vector<2x32xf32>
    %137 = arith.mulf %136, %134 : vector<2x32xf32>
    %138 = arith.mulf %129, %108 : vector<2x32xf32>
    %139 = arith.addf %137, %138 : vector<2x32xf32>
    %c8 = arith.constant 8 : index
    %c0_35 = arith.constant 0 : index
    %140 = vector.load %arg4[%c8, %c0_35] : memref<16x32xf32, #tpu.memory_space<vmem>>, vector<2x32xf32>
    tpu.vector_store %arg4[%c8, %c0_35], %139 {strides = array<i32>} : memref<16x32xf32, #tpu.memory_space<vmem>>, vector<2x32xf32>,
    %141 = vector.extract_strided_slice %15 {offsets = [8, 0], sizes = [2, 96], strides = [1, 1]} : vector<16x96xf32> to vector<2x96xf32>
    %cst_36 = arith.constant dense<0.000000e+00> : vector<2x96xf32>
    %142 = tpu.matmul %139, %7, %cst_36 {dimension_numbers = #tpu.dot_dimension_numbers<[1], [0], [0], [1], [0, 0, 1, 1], [], []>} : vector<2x32xf32>, vector<32x96xf32>, vector<2x96xf32> -> vector<2x96xf32>
    %143 = vector.broadcast %9 : vector<1x96xf32> to vector<2x96xf32>
    %144 = arith.addf %142, %143 : vector<2x96xf32>
    %145 = vector.extract_strided_slice %141 {offsets = [0, 0], sizes = [2, 32], strides = [1, 1]} : vector<2x96xf32> to vector<2x32xf32>
    %146 = vector.extract_strided_slice %144 {offsets = [0, 0], sizes = [2, 32], strides = [1, 1]} : vector<2x96xf32> to vector<2x32xf32>
    %147 = arith.addf %145, %146 : vector<2x32xf32>
    %148 = arith.negf %147 : vector<2x32xf32>
    %149 = math.exp %148 : vector<2x32xf32>
    %cst_37 = arith.constant 1.000000e+00 : f32
    %150 = vector.broadcast %cst_37 : f32 to vector<2x32xf32>
    %151 = arith.addf %150, %149 : vector<2x32xf32>
    %152 = arith.divf %150, %151 : vector<2x32xf32>
    %153 = vector.extract_strided_slice %141 {offsets = [0, 32], sizes = [2, 32], strides = [1, 1]} : vector<2x96xf32> to vector<2x32xf32>
    %154 = vector.extract_strided_slice %144 {offsets = [0, 32], sizes = [2, 32], strides = [1, 1]} : vector<2x96xf32> to vector<2x32xf32>
    %155 = arith.addf %153, %154 : vector<2x32xf32>
    %156 = arith.negf %155 : vector<2x32xf32>
    %157 = math.exp %156 : vector<2x32xf32>
    %cst_38 = arith.constant 1.000000e+00 : f32
    %158 = vector.broadcast %cst_38 : f32 to vector<2x32xf32>
    %159 = arith.addf %158, %157 : vector<2x32xf32>
    %160 = arith.divf %158, %159 : vector<2x32xf32>
    %161 = vector.extract_strided_slice %141 {offsets = [0, 64], sizes = [2, 32], strides = [1, 1]} : vector<2x96xf32> to vector<2x32xf32>
    %162 = vector.extract_strided_slice %144 {offsets = [0, 64], sizes = [2, 32], strides = [1, 1]} : vector<2x96xf32> to vector<2x32xf32>
    %163 = arith.mulf %152, %162 : vector<2x32xf32>
    %164 = arith.addf %161, %163 : vector<2x32xf32>
    %165 = math.tanh %164 : vector<2x32xf32>
    %cst_39 = arith.constant 1.000000e+00 : f32
    %166 = vector.broadcast %cst_39 : f32 to vector<2x32xf32>
    %167 = arith.subf %166, %160 : vector<2x32xf32>
    %168 = arith.mulf %167, %165 : vector<2x32xf32>
    %169 = arith.mulf %160, %139 : vector<2x32xf32>
    %170 = arith.addf %168, %169 : vector<2x32xf32>
    %c6 = arith.constant 6 : index
    %c0_40 = arith.constant 0 : index
    %171 = vector.load %arg4[%c6, %c0_40] : memref<16x32xf32, #tpu.memory_space<vmem>>, vector<2x32xf32>
    tpu.vector_store %arg4[%c6, %c0_40], %170 {strides = array<i32>} : memref<16x32xf32, #tpu.memory_space<vmem>>, vector<2x32xf32>,
    %172 = vector.extract_strided_slice %15 {offsets = [10, 0], sizes = [2, 96], strides = [1, 1]} : vector<16x96xf32> to vector<2x96xf32>
    %cst_41 = arith.constant dense<0.000000e+00> : vector<2x96xf32>
    %173 = tpu.matmul %170, %7, %cst_41 {dimension_numbers = #tpu.dot_dimension_numbers<[1], [0], [0], [1], [0, 0, 1, 1], [], []>} : vector<2x32xf32>, vector<32x96xf32>, vector<2x96xf32> -> vector<2x96xf32>
    %174 = vector.broadcast %9 : vector<1x96xf32> to vector<2x96xf32>
    %175 = arith.addf %173, %174 : vector<2x96xf32>
    %176 = vector.extract_strided_slice %172 {offsets = [0, 0], sizes = [2, 32], strides = [1, 1]} : vector<2x96xf32> to vector<2x32xf32>
    %177 = vector.extract_strided_slice %175 {offsets = [0, 0], sizes = [2, 32], strides = [1, 1]} : vector<2x96xf32> to vector<2x32xf32>
    %178 = arith.addf %176, %177 : vector<2x32xf32>
    %179 = arith.negf %178 : vector<2x32xf32>
    %180 = math.exp %179 : vector<2x32xf32>
    %cst_42 = arith.constant 1.000000e+00 : f32
    %181 = vector.broadcast %cst_42 : f32 to vector<2x32xf32>
    %182 = arith.addf %181, %180 : vector<2x32xf32>
    %183 = arith.divf %181, %182 : vector<2x32xf32>
    %184 = vector.extract_strided_slice %172 {offsets = [0, 32], sizes = [2, 32], strides = [1, 1]} : vector<2x96xf32> to vector<2x32xf32>
    %185 = vector.extract_strided_slice %175 {offsets = [0, 32], sizes = [2, 32], strides = [1, 1]} : vector<2x96xf32> to vector<2x32xf32>
    %186 = arith.addf %184, %185 : vector<2x32xf32>
    %187 = arith.negf %186 : vector<2x32xf32>
    %188 = math.exp %187 : vector<2x32xf32>
    %cst_43 = arith.constant 1.000000e+00 : f32
    %189 = vector.broadcast %cst_43 : f32 to vector<2x32xf32>
    %190 = arith.addf %189, %188 : vector<2x32xf32>
    %191 = arith.divf %189, %190 : vector<2x32xf32>
    %192 = vector.extract_strided_slice %172 {offsets = [0, 64], sizes = [2, 32], strides = [1, 1]} : vector<2x96xf32> to vector<2x32xf32>
    %193 = vector.extract_strided_slice %175 {offsets = [0, 64], sizes = [2, 32], strides = [1, 1]} : vector<2x96xf32> to vector<2x32xf32>
    %194 = arith.mulf %183, %193 : vector<2x32xf32>
    %195 = arith.addf %192, %194 : vector<2x32xf32>
    %196 = math.tanh %195 : vector<2x32xf32>
    %cst_44 = arith.constant 1.000000e+00 : f32
    %197 = vector.broadcast %cst_44 : f32 to vector<2x32xf32>
    %198 = arith.subf %197, %191 : vector<2x32xf32>
    %199 = arith.mulf %198, %196 : vector<2x32xf32>
    %200 = arith.mulf %191, %170 : vector<2x32xf32>
    %201 = arith.addf %199, %200 : vector<2x32xf32>
    %c4 = arith.constant 4 : index
    %c0_45 = arith.constant 0 : index
    %202 = vector.load %arg4[%c4, %c0_45] : memref<16x32xf32, #tpu.memory_space<vmem>>, vector<2x32xf32>
    tpu.vector_store %arg4[%c4, %c0_45], %201 {strides = array<i32>} : memref<16x32xf32, #tpu.memory_space<vmem>>, vector<2x32xf32>,
    %203 = vector.extract_strided_slice %15 {offsets = [12, 0], sizes = [2, 96], strides = [1, 1]} : vector<16x96xf32> to vector<2x96xf32>
    %cst_46 = arith.constant dense<0.000000e+00> : vector<2x96xf32>
    %204 = tpu.matmul %201, %7, %cst_46 {dimension_numbers = #tpu.dot_dimension_numbers<[1], [0], [0], [1], [0, 0, 1, 1], [], []>} : vector<2x32xf32>, vector<32x96xf32>, vector<2x96xf32> -> vector<2x96xf32>
    %205 = vector.broadcast %9 : vector<1x96xf32> to vector<2x96xf32>
    %206 = arith.addf %204, %205 : vector<2x96xf32>
    %207 = vector.extract_strided_slice %203 {offsets = [0, 0], sizes = [2, 32], strides = [1, 1]} : vector<2x96xf32> to vector<2x32xf32>
    %208 = vector.extract_strided_slice %206 {offsets = [0, 0], sizes = [2, 32], strides = [1, 1]} : vector<2x96xf32> to vector<2x32xf32>
    %209 = arith.addf %207, %208 : vector<2x32xf32>
    %210 = arith.negf %209 : vector<2x32xf32>
    %211 = math.exp %210 : vector<2x32xf32>
    %cst_47 = arith.constant 1.000000e+00 : f32
    %212 = vector.broadcast %cst_47 : f32 to vector<2x32xf32>
    %213 = arith.addf %212, %211 : vector<2x32xf32>
    %214 = arith.divf %212, %213 : vector<2x32xf32>
    %215 = vector.extract_strided_slice %203 {offsets = [0, 32], sizes = [2, 32], strides = [1, 1]} : vector<2x96xf32> to vector<2x32xf32>
    %216 = vector.extract_strided_slice %206 {offsets = [0, 32], sizes = [2, 32], strides = [1, 1]} : vector<2x96xf32> to vector<2x32xf32>
    %217 = arith.addf %215, %216 : vector<2x32xf32>
    %218 = arith.negf %217 : vector<2x32xf32>
    %219 = math.exp %218 : vector<2x32xf32>
    %cst_48 = arith.constant 1.000000e+00 : f32
    %220 = vector.broadcast %cst_48 : f32 to vector<2x32xf32>
    %221 = arith.addf %220, %219 : vector<2x32xf32>
    %222 = arith.divf %220, %221 : vector<2x32xf32>
    %223 = vector.extract_strided_slice %203 {offsets = [0, 64], sizes = [2, 32], strides = [1, 1]} : vector<2x96xf32> to vector<2x32xf32>
    %224 = vector.extract_strided_slice %206 {offsets = [0, 64], sizes = [2, 32], strides = [1, 1]} : vector<2x96xf32> to vector<2x32xf32>
    %225 = arith.mulf %214, %224 : vector<2x32xf32>
    %226 = arith.addf %223, %225 : vector<2x32xf32>
    %227 = math.tanh %226 : vector<2x32xf32>
    %cst_49 = arith.constant 1.000000e+00 : f32
    %228 = vector.broadcast %cst_49 : f32 to vector<2x32xf32>
    %229 = arith.subf %228, %222 : vector<2x32xf32>
    %230 = arith.mulf %229, %227 : vector<2x32xf32>
    %231 = arith.mulf %222, %201 : vector<2x32xf32>
    %232 = arith.addf %230, %231 : vector<2x32xf32>
    %c2 = arith.constant 2 : index
    %c0_50 = arith.constant 0 : index
    %233 = vector.load %arg4[%c2, %c0_50] : memref<16x32xf32, #tpu.memory_space<vmem>>, vector<2x32xf32>
    tpu.vector_store %arg4[%c2, %c0_50], %232 {strides = array<i32>} : memref<16x32xf32, #tpu.memory_space<vmem>>, vector<2x32xf32>,
    %234 = vector.extract_strided_slice %15 {offsets = [14, 0], sizes = [2, 96], strides = [1, 1]} : vector<16x96xf32> to vector<2x96xf32>
    %cst_51 = arith.constant dense<0.000000e+00> : vector<2x96xf32>
    %235 = tpu.matmul %232, %7, %cst_51 {dimension_numbers = #tpu.dot_dimension_numbers<[1], [0], [0], [1], [0, 0, 1, 1], [], []>} : vector<2x32xf32>, vector<32x96xf32>, vector<2x96xf32> -> vector<2x96xf32>
    %236 = vector.broadcast %9 : vector<1x96xf32> to vector<2x96xf32>
    %237 = arith.addf %235, %236 : vector<2x96xf32>
    %238 = vector.extract_strided_slice %234 {offsets = [0, 0], sizes = [2, 32], strides = [1, 1]} : vector<2x96xf32> to vector<2x32xf32>
    %239 = vector.extract_strided_slice %237 {offsets = [0, 0], sizes = [2, 32], strides = [1, 1]} : vector<2x96xf32> to vector<2x32xf32>
    %240 = arith.addf %238, %239 : vector<2x32xf32>
    %241 = arith.negf %240 : vector<2x32xf32>
    %242 = math.exp %241 : vector<2x32xf32>
    %cst_52 = arith.constant 1.000000e+00 : f32
    %243 = vector.broadcast %cst_52 : f32 to vector<2x32xf32>
    %244 = arith.addf %243, %242 : vector<2x32xf32>
    %245 = arith.divf %243, %244 : vector<2x32xf32>
    %246 = vector.extract_strided_slice %234 {offsets = [0, 32], sizes = [2, 32], strides = [1, 1]} : vector<2x96xf32> to vector<2x32xf32>
    %247 = vector.extract_strided_slice %237 {offsets = [0, 32], sizes = [2, 32], strides = [1, 1]} : vector<2x96xf32> to vector<2x32xf32>
    %248 = arith.addf %246, %247 : vector<2x32xf32>
    %249 = arith.negf %248 : vector<2x32xf32>
    %250 = math.exp %249 : vector<2x32xf32>
    %cst_53 = arith.constant 1.000000e+00 : f32
    %251 = vector.broadcast %cst_53 : f32 to vector<2x32xf32>
    %252 = arith.addf %251, %250 : vector<2x32xf32>
    %253 = arith.divf %251, %252 : vector<2x32xf32>
    %254 = vector.extract_strided_slice %234 {offsets = [0, 64], sizes = [2, 32], strides = [1, 1]} : vector<2x96xf32> to vector<2x32xf32>
    %255 = vector.extract_strided_slice %237 {offsets = [0, 64], sizes = [2, 32], strides = [1, 1]} : vector<2x96xf32> to vector<2x32xf32>
    %256 = arith.mulf %245, %255 : vector<2x32xf32>
    %257 = arith.addf %254, %256 : vector<2x32xf32>
    %258 = math.tanh %257 : vector<2x32xf32>
    %cst_54 = arith.constant 1.000000e+00 : f32
    %259 = vector.broadcast %cst_54 : f32 to vector<2x32xf32>
    %260 = arith.subf %259, %253 : vector<2x32xf32>
    %261 = arith.mulf %260, %258 : vector<2x32xf32>
    %262 = arith.mulf %253, %232 : vector<2x32xf32>
    %263 = arith.addf %261, %262 : vector<2x32xf32>
    %c0_55 = arith.constant 0 : index
    %c0_56 = arith.constant 0 : index
    %264 = vector.load %arg4[%c0_55, %c0_56] : memref<16x32xf32, #tpu.memory_space<vmem>>, vector<2x32xf32>
    tpu.vector_store %arg4[%c0_55, %c0_56], %263 {strides = array<i32>} : memref<16x32xf32, #tpu.memory_space<vmem>>, vector<2x32xf32>,
    %c0_57 = arith.constant 0 : index
    %c0_58 = arith.constant 0 : index
    %265 = vector.load %arg4[%c0_57, %c0_58] : memref<16x32xf32, #tpu.memory_space<vmem>>, vector<16x32xf32>
    %266 = arith.truncf %265 : vector<16x32xf32> to vector<16x32xbf16>
    %cst_59 = arith.constant dense<0.000000e+00> : vector<16x96xf32>
    %267 = tpu.matmul %266, %1, %cst_59 {dimension_numbers = #tpu.dot_dimension_numbers<[1], [0], [0], [1], [0, 0, 1, 1], [], []>} : vector<16x32xbf16>, vector<32x96xbf16>, vector<16x96xf32> -> vector<16x96xf32>
    %268 = vector.broadcast %10 : vector<1x96xf32> to vector<16x96xf32>
    %269 = arith.addf %267, %268 : vector<16x96xf32>
    %270 = vector.extract_strided_slice %269 {offsets = [0, 0], sizes = [2, 32], strides = [1, 1]} : vector<16x96xf32> to vector<2x32xf32>
    %271 = vector.extract_strided_slice %269 {offsets = [0, 32], sizes = [16, 32], strides = [1, 1]} : vector<16x96xf32> to vector<16x32xf32>
    %272 = vector.extract_strided_slice %269 {offsets = [0, 64], sizes = [16, 32], strides = [1, 1]} : vector<16x96xf32> to vector<16x32xf32>
    %273 = arith.truncf %270 : vector<2x32xf32> to vector<2x32xbf16>
    %cst_60 = arith.constant dense<0.000000e+00> : vector<16x32xf32>
    %274 = tpu.matmul %6, %273, %cst_60 {dimension_numbers = #tpu.dot_dimension_numbers<[1], [0], [0], [1], [0, 0, 1, 1], [], []>} : vector<16x2xbf16>, vector<2x32xbf16>, vector<16x32xf32> -> vector<16x32xf32>
    %275 = arith.mulf %274, %271 : vector<16x32xf32>
    %276 = arith.truncf %275 : vector<16x32xf32> to vector<16x32xbf16>
    %cst_61 = arith.constant dense<0.000000e+00> : vector<16x4xf32>
    %277 = tpu.matmul %276, %2, %cst_61 {dimension_numbers = #tpu.dot_dimension_numbers<[1], [0], [0], [1], [0, 0, 1, 1], [], []>} : vector<16x32xbf16>, vector<32x4xbf16>, vector<16x4xf32> -> vector<16x4xf32>
    %cst_62 = arith.constant dense<0xFF800000> : vector<16xf32>
    %278 = vector.multi_reduction <maximumf>, %277, %cst_62 [1] : vector<16x4xf32> to vector<16xf32>
    %279 = vector.shape_cast %278 : vector<16xf32> to vector<16x1xf32>
    %cst_63 = arith.constant dense<0xFF800000> : vector<1xf32>
    %280 = vector.multi_reduction <maximumf>, %279, %cst_63 [0] : vector<16x1xf32> to vector<1xf32>
    %281 = vector.shape_cast %280 : vector<1xf32> to vector<1x1xf32>
    %282 = vector.broadcast %281 : vector<1x1xf32> to vector<16x4xf32>
    %283 = arith.subf %277, %282 : vector<16x4xf32>
    %284 = math.exp %283 : vector<16x4xf32>
    %285 = arith.truncf %284 : vector<16x4xf32> to vector<16x4xbf16>
    %cst_64 = arith.constant dense<0.000000e+00> : vector<16x32xf32>
    %286 = tpu.matmul %285, %3, %cst_64 {dimension_numbers = #tpu.dot_dimension_numbers<[1], [0], [0], [1], [0, 0, 1, 1], [], []>} : vector<16x4xbf16>, vector<4x32xbf16>, vector<16x32xf32> -> vector<16x32xf32>
    %287 = arith.mulf %286, %272 : vector<16x32xf32>
    %288 = arith.truncf %287 : vector<16x32xf32> to vector<16x32xbf16>
    %cst_65 = arith.constant dense<0.000000e+00> : vector<2x32xf32>
    %289 = tpu.matmul %5, %288, %cst_65 {dimension_numbers = #tpu.dot_dimension_numbers<[1], [0], [0], [1], [0, 0, 1, 1], [], []>} : vector<2x16xbf16>, vector<16x32xbf16>, vector<2x32xf32> -> vector<2x32xf32>
    %290 = arith.truncf %284 : vector<16x4xf32> to vector<16x4xbf16>
    %cst_66 = arith.constant dense<0.000000e+00> : vector<2x4xf32>
    %291 = tpu.matmul %5, %290, %cst_66 {dimension_numbers = #tpu.dot_dimension_numbers<[1], [0], [0], [1], [0, 0, 1, 1], [], []>} : vector<2x16xbf16>, vector<16x4xbf16>, vector<2x4xf32> -> vector<2x4xf32>
    %292 = tpu.reciprocal %291 : vector<2x4xf32> -> vector<2x4xf32>
    %293 = arith.truncf %292 : vector<2x4xf32> to vector<2x4xbf16>
    %cst_67 = arith.constant dense<0.000000e+00> : vector<2x32xf32>
    %294 = tpu.matmul %293, %3, %cst_67 {dimension_numbers = #tpu.dot_dimension_numbers<[1], [0], [0], [1], [0, 0, 1, 1], [], []>} : vector<2x4xbf16>, vector<4x32xbf16>, vector<2x32xf32> -> vector<2x32xf32>
    %295 = arith.mulf %289, %294 : vector<2x32xf32>
    %296 = arith.truncf %295 : vector<2x32xf32> to vector<2x32xbf16>
    %cst_68 = arith.constant dense<0.000000e+00> : vector<2x4xf32>
    %297 = tpu.matmul %296, %4, %cst_68 {dimension_numbers = #tpu.dot_dimension_numbers<[1], [0], [0], [1], [0, 0, 1, 1], [], []>} : vector<2x32xbf16>, vector<32x4xbf16>, vector<2x4xf32> -> vector<2x4xf32>
    %298 = vector.broadcast %11 : vector<1x4xf32> to vector<2x4xf32>
    %299 = arith.addf %297, %298 : vector<2x4xf32>
    %c0_69 = arith.constant 0 : index
    %c0_70 = arith.constant 0 : index
    %300 = vector.load %arg3[%c0_69, %c0_70] : memref<2x4xf32, #tpu.memory_space<vmem>>, vector<2x4xf32>
    tpu.vector_store %arg3[%c0_69, %c0_70], %299 {strides = array<i32>} : memref<2x4xf32, #tpu.memory_space<vmem>>, vector<2x4xf32>,
    return
  }
}

</mosaic_0001>

<bundles_post_ra>
// kernel: tpu_custom_call.1
= control target key start
LH: loop header
LB: loop body
LE: loop exit
PB: predicated region body
PF: predicated region fallthrough
CT: control target
= control target key end

     0   :  { %8 = vsyncpa [#allocation4], 0  ;;  %s2139_s0 = inlined_call_operand.vmem [shape: bf16[16,4], index: 0, kind: input, shape index: {}]   ;;  %s2140_s1 = inlined_call_operand.hbm [shape: bf16[160,96], index: 1, kind: input, shape index: {}]   ;;  %s2141_s2 = inlined_call_operand.hbm [shape: f32[40,96], index: 2, kind: input, shape index: {}]   ;;  %s2142_s3 = inlined_call_operand.hbm [shape: f32[2,4], index: 3, kind: output, shape index: {}]  }
   0x1   :  { %9 = vsyncpa [#allocation7], 0 }
   0x2   :  { %10 = vsyncpa [#allocation5], 0  ;;  %s1855_s12 = smov [#allocation3]  }
   0x3   :  { %s18_s13 = sshll.u32 %s1855_s12, 4  ;;  %s19_s13 = int_to_ptr.vmem [resolvable:$true] %s18_s13 }
   0x4   :  { %s1797_s14 = scalar_lea.vmem %s19_s13, 1280  ;;  %p1802_p1 = scmp.lt.s32.totalorder %s19_s13, %s19_s13 }
   0x5   :  { %p1798_p0 = scmp.ne.s32.totalorder %s19_s13, %s1797_s14  ;;  %p1803_p2 = scmp.lt.s32.totalorder %s1797_s14, %s1797_s14 }
   0x7   :  { %p1804_p3 = por %p1803_p2, %p1802_p1 }
   0x9   :  { %p1805_p4 = pnand %p1804_p3, %p1798_p0 }
   0xb   :  { %1808 = shalt.err (!%p1805_p4)
}
   0xc   :  { %s1856_s15 = smov 64   ;;  %s1857_s16 = smov 4  }
   0xd   :  { %24 = dma.hbm_to_vmem [thread:$0]  %s2140_s1, 1280, %s19_s13, [#allocation4], %s1856_s15, %s1856_s15, %s1857_s16  }
   0xe   :  { %s1858_s19 = smov [#allocation6]  }
   0xf   :  { %s30_s20 = sshll.u32 %s1858_s19, 4  ;;  %s31_s20 = int_to_ptr.vmem [resolvable:$true] %s30_s20 }
  0x10   :  { %s1817_s21 = scalar_lea.vmem %s31_s20, 640  ;;  %p1822_p6 = scmp.lt.s32.totalorder %s31_s20, %s31_s20 }
  0x11   :  { %p1818_p5 = scmp.ne.s32.totalorder %s31_s20, %s1817_s21  ;;  %p1823_p7 = scmp.lt.s32.totalorder %s1817_s21, %s1817_s21 }
  0x13   :  { %p1824_p8 = por %p1823_p7, %p1822_p6 }
  0x15   :  { %p1825_p9 = pnand %p1824_p8, %p1818_p5 }
  0x17   :  { %1828 = shalt.err (!%p1825_p9)
}
  0x18   :  { %s1859_s22 = smov 128   ;;  %s1860_s23 = smov 8  }
  0x19   :  { %36 = dma.hbm_to_vmem [thread:$0]  %s2141_s2, 640, %s31_s20, [#allocation7], %s1859_s22, %s1859_s22, %s1860_s23  }
  0x1a   :  { %1849 = dma.done.wait [#allocation4], 1280  }
  0x1b   :  { %1850 = vsyncadd [#allocation4], 4294966016 }
  0x1c   :  { %1851 = dma.done.wait [#allocation7], 640  }
  0x1d   :  { %1852 = vsyncadd [#allocation7], 4294966656  ;;  %v1861_v0 = vmov 0.0   ;;  %vm1862_vm0 = vmmov 0   ;;  %vm84_vm1 = vcmask 1041408   ;;  %v1899_v1 = vld [vmem:[#allocation6 + $0x18] sm:$0xff] }
  0x1e   :  { %1575 = vmatprep.subr.mxu1 %v1861_v0  ;;  %1569 = vmatprep.subr.bf16.mxu0 %v1861_v0  ;;  %v1901_v2 = vld [vmem:[#allocation6 + $0x10] sm:$0xff]  ;;  %v1905_v5 = vld [vmem:[#allocation6 + $0x8] sm:$0xff]  ;;  %v1727_v6 = vld [vmem:[%s2139_s0] sm:$0xff]   ;;  %vm80_vm2 = vcmask 31744   ;;  %s1863_s0 = smov 96   ;;  %vm237_vm3 = vcmask 254976  }
  0x1f   :  { %1571 = vmatprep.mubr.msk.bf16.mxu0 %vm1862_vm0, %v1861_v0  ;;  %1583 = vmatprep.mubr.msk.f32.mxu1 %vm1862_vm0, %v1861_v0  ;;  %v44_v3 = vld [vmem:[#allocation3] sm:$0x3]  ;;  %v1912_v7 = vld [vmem:[#allocation6] sm:$0xff]  ;;  %vm133_vm4 = vcmask 261120   ;;  %vm345_vm5 = vcmask 257026   ;;  %vm567_vm6 = vcmask 261126  }
  0x20   :  { %1576 = vmatpush3.msra.mxu1 %v1899_v1  ;;  %v86_v4 = vsel %vm84_vm1, %v44_v3, 0  ;;  %v1942_v9 = vld [vmem:[#allocation6 + $0x21] ss:$0 sm:$0xff]  ;;  %v1472_v12 = vld [vmem:[#allocation6 + $0x20] ss:$0 sm:$0xff]  ;;  %vm456_vm7 = vcmask 259076  }
  0x21   :  { %1577 = vmatprep.subr.mxu1 %v1861_v0  ;;  %1570 = vmatpush3.bf16.msra.mxu0 %v86_v4  ;;  %vm1076_vm8 = vcmask 1040384   ;;  %vm1072_vm9 = vcmask 15360   ;;  %vm1264_vm10 = vcmask 130048   ;;  %s1864_s26 = smov [#allocation8]   ;;  %vm1454_vm11 = vcmask 25600  }
  0x22   :  { %1578 = vmatpush3.msra.mxu1 %v1901_v2  ;;  %1586 = vmatprep.subr.mxu0 %v1861_v0  ;;  %s1462_s27 = sshll.u32 %s1864_s26, 4  ;;  %s1463_s27 = int_to_ptr.vmem [resolvable:$true] %s1462_s27 }
  0x23   :  { %1579 = vmatprep.subr.mxu1 %v1861_v0  ;;  %s1829_s28 = scalar_lea.vmem %s1463_s27, 32  ;;  %p1834_p11 = scmp.lt.s32.totalorder %s1463_s27, %s1463_s27 }
  0x24   :  { %1580 = vmatpush3.msra.mxu1 %v1905_v5  ;;  %1572 = vmatmul.mubr.msk.bf16.vlgmr.msra.gmra.mxu0 %vm80_vm2, %v1727_v6  ;;  %p1830_p10 = scmp.ne.s32.totalorder %s1463_s27, %s1829_s28  ;;  %p1835_p12 = scmp.lt.s32.totalorder %s1829_s28, %s1829_s28 }
  0x25   :  { %1581 = vmatprep.subr.mxu1 %v1861_v0  ;;  %1587 = vmatpush3.msra.mxu0 %v1899_v1 }
  0x26   :  { %1582 = vmatpush3.msra.mxu1 %v1912_v7  ;;  %1588 = vmatprep.subr.mxu0 %v1861_v0  ;;  %p1836_p13 = por %p1835_p12, %p1834_p11 }
  0x27   :  { %1584 = vmatmul.mubr.f32.vlgmr.msra.gmra.mxu1 %v1861_v0  ;;  %1589 = vmatpush3.msra.mxu0 %v1901_v2 }
  0x28   :  { %1590 = vmatprep.subr.mxu0 %v1861_v0  ;;  %1594 = vmatprep.mubr.msk.f32.mxu0 %vm1862_vm0, %v1861_v0  ;;  %p1837_p0 = pnand %p1836_p13, %p1830_p10 }
  0x29   :  { %1591 = vmatpush3.msra.mxu0 %v1905_v5  ;;  %1597 = vmatprep.subr.mxu1 %v1861_v0 }
  0x2a   :  { %1592 = vmatprep.subr.mxu0 %v1861_v0  ;;  %1598 = vmatpush3.msra.mxu1 %v1899_v1 }
  0x2b   :  { %1593 = vmatpush3.msra.mxu0 %v1912_v7  ;;  %1599 = vmatprep.subr.mxu1 %v1861_v0 }
  0x2c   :  { %1600 = vmatpush3.msra.mxu1 %v1901_v2  ;;  %1605 = vmatprep.mubr.msk.f32.mxu1 %vm1862_vm0, %v1861_v0 }
  0x2d   :  { %1601 = vmatprep.subr.mxu1 %v1861_v0  ;;  %1608 = vmatprep.subr.mxu0 %v1861_v0 }
  0x2e   :  { %1602 = vmatpush3.msra.mxu1 %v1905_v5 }
  0x2f   :  { %1603 = vmatprep.subr.mxu1 %v1861_v0 }
  0x30   :  { %1604 = vmatpush3.msra.mxu1 %v1912_v7 }
  0x31   :  { %1619 = vmatprep.subr.mxu1 %v1861_v0 }
  0xe4   :  { %v122_v8 = vpop.f32.mrf.mxu0 }
  0xe5   :  { %v1948_v18 = vadd.f32 %v1472_v12, %v122_v8 }
  0xe6   :  { %v1573_v10 = vpop.f32.mrf.mxu0 }
  0xe7   :  { %v203_v11 = vpop.f32.mrf.mxu1 }
  0xe8   :  { %v204_v13 = vadd.f32 %v1942_v9, %v203_v11  ;;  %v125_v14 = vpop.f32.mrf.mxu0 }
  0xe9   :  { %v1585_v15 = vpop.f32.mrf.mxu1  ;;  %v1945_v16 = vadd.f32 %v1472_v12, %v125_v14 }
  0xea   :  { %215 = vrot.lane.b32.xlu0 %v204_v13, %s1856_s15  ;;  %v1574_v17 = vpop.f32.mrf.mxu0  ;;  %v207_v19 = vadd.f32 %v204_v13, %v1948_v18 }
  0xec   :  { %v1476_v20 = vmul.f32 -1.442695, %v207_v19 }
  0xee   :  { %1735 = vpow2.f32 %v1476_v20 }
  0xfb   :  { %v1736_v21 = vpop.eup %1735 }
  0xfc   :  { %v211_v22 = vadd.f32 1.0, %v1736_v21 }
  0xfe   :  { %1737 = vrcp.f32 %v211_v22 }
 0x10b   :  { %v1738_v23 = vpop.eup %1737 }
 0x10c   :  { %v225_v29 = vsub.f32 1.0, %v1738_v23  ;;  %v231_v31 = vmul.f32 0.0, %v1738_v23 }
 0x15c   :  { %v216_v24 = vpop.permute.xlu0 %215 }
 0x15d   :  { %v218_v25 = vmul.f32 %v1738_v23, %v216_v24 }
 0x15f   :  { %220 = vrot.lane.b32.xlu0 %v218_v25, %s1856_s15 }
 0x1d1   :  { %v221_v26 = vpop.permute.xlu0 %220 }
 0x1d2   :  { %v223_v27 = vadd.f32 %v221_v26, %v1948_v18 }
 0x1d4   :  { %1739 = vtanh.f32 %v223_v27 }
 0x1e1   :  { %v1740_v28 = vpop.eup %1739 }
 0x1e2   :  { %227 = vrot.lane.b32.xlu1 %v1740_v28, %s1863_s0 }
 0x254   :  { %v228_v30 = vpop.permute.xlu1 %227 }
 0x255   :  { %v230_v32 = vmul.f32 %v228_v30, %v225_v29 }
 0x257   :  { %v232_v33 = vadd.f32 %v231_v31, %v230_v32 }
 0x259   :  { %234 = vrot.lane.b32.xlu1 %v232_v33, %s1863_s0  ;;  %v337_v49 = vrot.slane %v232_v33, 6 }
 0x2cb   :  { %v235_v34 = vpop.permute.xlu1 %234 }
 0x2cc   :  { %238 = vst.msk [vmem:[#allocation2 + $0xe] sm:$0x3] %vm237_vm3, %v235_v34  ;;  %1595 = vmatmul.mubr.msk.f32.vlgmr.msra.gmra.mxu0 %vm133_vm4, %v235_v34 }
 0x2cd   :  { %1609 = vmatpush3.msra.mxu0 %v1899_v1  ;;  %1616 = vmatprep.mubr.msk.f32.mxu0 %vm1862_vm0, %v1861_v0 }
 0x2ce   :  { %1610 = vmatprep.subr.mxu0 %v1861_v0 }
 0x2cf   :  { %1611 = vmatpush3.msra.mxu0 %v1901_v2 }
 0x2d0   :  { %1612 = vmatprep.subr.mxu0 %v1861_v0 }
 0x2d1   :  { %1613 = vmatpush3.msra.mxu0 %v1905_v5 }
 0x2d2   :  { %1614 = vmatprep.subr.mxu0 %v1861_v0 }
 0x2d3   :  { %1615 = vmatpush3.msra.mxu0 %v1912_v7 }
 0x2d4   :  { %1630 = vmatprep.subr.mxu0 %v1861_v0 }
 0x38c   :  { %v307_v35 = vpop.f32.mrf.mxu0 }
 0x38d   :  { %v308_v36 = vadd.f32 %v1942_v9, %v307_v35 }
 0x38e   :  { %v1596_v37 = vpop.f32.mrf.mxu0 }
 0x38f   :  { %v312_v38 = vrot.slane %v308_v36, 6 }
 0x391   :  { %321 = vrot.lane.b32.xlu0 %v312_v38, %s1856_s15  ;;  %v314_v39 = vadd.f32 %v312_v38, %v1948_v18 }
 0x393   :  { %v1478_v40 = vmul.f32 -1.442695, %v314_v39 }
 0x395   :  { %1741 = vpow2.f32 %v1478_v40 }
 0x3a2   :  { %v1742_v41 = vpop.eup %1741 }
 0x3a3   :  { %v318_v42 = vadd.f32 1.0, %v1742_v41 }
 0x3a5   :  { %1743 = vrcp.f32 %v318_v42 }
 0x3b2   :  { %v1744_v43 = vpop.eup %1743 }
 0x3b3   :  { %v331_v50 = vsub.f32 1.0, %v1744_v43  ;;  %v339_v52 = vmul.f32 %v1744_v43, %v337_v49 }
 0x403   :  { %v322_v44 = vpop.permute.xlu0 %321 }
 0x404   :  { %v324_v45 = vmul.f32 %v1744_v43, %v322_v44 }
 0x406   :  { %326 = vrot.lane.b32.xlu1 %v324_v45, %s1856_s15 }
 0x478   :  { %v327_v46 = vpop.permute.xlu1 %326 }
 0x479   :  { %v329_v47 = vadd.f32 %v327_v46, %v1948_v18 }
 0x47b   :  { %1745 = vtanh.f32 %v329_v47 }
 0x488   :  { %v1746_v48 = vpop.eup %1745 }
 0x489   :  { %333 = vrot.lane.b32.xlu0 %v1746_v48, %s1863_s0 }
 0x4fb   :  { %v334_v51 = vpop.permute.xlu0 %333 }
 0x4fc   :  { %v336_v53 = vmul.f32 %v334_v51, %v331_v50 }
 0x4fe   :  { %v1973_v54 = vadd.f32 %v339_v52, %v336_v53 }
 0x500   :  { %v347_v55 = vrot.slane %v1973_v54, 2  ;;  %v448_v14 = vrot.slane %v1973_v54, 6 }
 0x502   :  { %348 = vrot.lane.b32.xlu1 %v347_v55, %s1863_s0 }
 0x574   :  { %v349_v56 = vpop.permute.xlu1 %348 }
 0x575   :  { %1606 = vmatmul.mubr.msk.f32.vlgmr.msra.gmra.mxu1 %vm133_vm4, %v349_v56 }
 0x576   :  { %1620 = vmatpush3.msra.mxu1 %v1899_v1  ;;  %1627 = vmatprep.mubr.msk.f32.mxu1 %vm1862_vm0, %v1861_v0 }
 0x577   :  { %1621 = vmatprep.subr.mxu1 %v1861_v0 }
 0x578   :  { %1622 = vmatpush3.msra.mxu1 %v1901_v2 }
 0x579   :  { %1623 = vmatprep.subr.mxu1 %v1861_v0 }
 0x57a   :  { %1624 = vmatpush3.msra.mxu1 %v1905_v5 }
 0x57b   :  { %1625 = vmatprep.subr.mxu1 %v1861_v0 }
 0x57c   :  { %1626 = vmatpush3.msra.mxu1 %v1912_v7 }
 0x57d   :  { %1641 = vmatprep.subr.mxu1 %v1861_v0 }
 0x635   :  { %v418_v57 = vpop.f32.mrf.mxu1 }
 0x636   :  { %v419_v58 = vadd.f32 %v1942_v9, %v418_v57 }
 0x637   :  { %v1607_v59 = vpop.f32.mrf.mxu1 }
 0x638   :  { %v423_v60 = vrot.slane %v419_v58, 4 }
 0x63a   :  { %432 = vrot.lane.b32.xlu0 %v423_v60, %s1856_s15  ;;  %v425_v61 = vadd.f32 %v423_v60, %v1948_v18 }
 0x63c   :  { %v1480_v62 = vmul.f32 -1.442695, %v425_v61 }
 0x63e   :  { %1747 = vpow2.f32 %v1480_v62 }
 0x64b   :  { %v1748_v63 = vpop.eup %1747 }
 0x64c   :  { %v429_v3 = vadd.f32 1.0, %v1748_v63 }
 0x64e   :  { %1749 = vrcp.f32 %v429_v3 }
 0x65b   :  { %v1750_v4 = vpop.eup %1749 }
 0x65c   :  { %v442_v13 = vsub.f32 1.0, %v1750_v4  ;;  %v450_v17 = vmul.f32 %v1750_v4, %v448_v14 }
 0x6ac   :  { %v433_v6 = vpop.permute.xlu0 %432 }
 0x6ad   :  { %v435_v8 = vmul.f32 %v1750_v4, %v433_v6 }
 0x6af   :  { %437 = vrot.lane.b32.xlu1 %v435_v8, %s1856_s15 }
 0x721   :  { %v438_v10 = vpop.permute.xlu1 %437 }
 0x722   :  { %v440_v11 = vadd.f32 %v438_v10, %v1948_v18 }
 0x724   :  { %1751 = vtanh.f32 %v440_v11 }
 0x731   :  { %v1752_v12 = vpop.eup %1751 }
 0x732   :  { %444 = vrot.lane.b32.xlu0 %v1752_v12, %s1863_s0 }
 0x7a4   :  { %v445_v15 = vpop.permute.xlu0 %444 }
 0x7a5   :  { %v447_v19 = vmul.f32 %v445_v15, %v442_v13 }
 0x7a7   :  { %v1995_v20 = vadd.f32 %v450_v17, %v447_v19 }
 0x7a9   :  { %v458_v21 = vrot.slane %v1995_v20, 4  ;;  %v559_v38 = vrot.slane %v1995_v20, 6 }
 0x7ab   :  { %459 = vrot.lane.b32.xlu1 %v458_v21, %s1863_s0 }
 0x81d   :  { %v460_v22 = vpop.permute.xlu1 %459 }
 0x81e   :  { %1617 = vmatmul.mubr.msk.f32.vlgmr.msra.gmra.mxu0 %vm133_vm4, %v460_v22 }
 0x81f   :  { %1631 = vmatpush3.msra.mxu0 %v1899_v1  ;;  %1638 = vmatprep.mubr.msk.f32.mxu0 %vm1862_vm0, %v1861_v0 }
 0x820   :  { %1632 = vmatprep.subr.mxu0 %v1861_v0 }
 0x821   :  { %1633 = vmatpush3.msra.mxu0 %v1901_v2 }
 0x822   :  { %1634 = vmatprep.subr.mxu0 %v1861_v0 }
 0x823   :  { %1635 = vmatpush3.msra.mxu0 %v1905_v5 }
 0x824   :  { %1636 = vmatprep.subr.mxu0 %v1861_v0 }
 0x825   :  { %1637 = vmatpush3.msra.mxu0 %v1912_v7 }
 0x826   :  { %1652 = vmatprep.subr.mxu0 %v1861_v0 }
 0x8de   :  { %v529_v23 = vpop.f32.mrf.mxu0 }
 0x8df   :  { %v530_v24 = vadd.f32 %v1942_v9, %v529_v23 }
 0x8e0   :  { %v1618_v25 = vpop.f32.mrf.mxu0 }
 0x8e1   :  { %v534_v26 = vrot.slane %v530_v24, 2 }
 0x8e3   :  { %543 = vrot.lane.b32.xlu0 %v534_v26, %s1856_s15  ;;  %v536_v27 = vadd.f32 %v534_v26, %v1948_v18 }
 0x8e5   :  { %v1482_v28 = vmul.f32 -1.442695, %v536_v27 }
 0x8e7   :  { %1753 = vpow2.f32 %v1482_v28 }
 0x8f4   :  { %v1754_v29 = vpop.eup %1753 }
 0x8f5   :  { %v540_v30 = vadd.f32 1.0, %v1754_v29 }
 0x8f7   :  { %1755 = vrcp.f32 %v540_v30 }
 0x904   :  { %v1756_v31 = vpop.eup %1755 }
 0x905   :  { %v553_v37 = vsub.f32 1.0, %v1756_v31  ;;  %v561_v40 = vmul.f32 %v1756_v31, %v559_v38 }
 0x955   :  { %v544_v32 = vpop.permute.xlu0 %543 }
 0x956   :  { %v546_v33 = vmul.f32 %v1756_v31, %v544_v32 }
 0x958   :  { %548 = vrot.lane.b32.xlu1 %v546_v33, %s1856_s15 }
 0x9ca   :  { %v549_v34 = vpop.permute.xlu1 %548 }
 0x9cb   :  { %v551_v35 = vadd.f32 %v549_v34, %v1948_v18 }
 0x9cd   :  { %1757 = vtanh.f32 %v551_v35 }
 0x9da   :  { %v1758_v36 = vpop.eup %1757 }
 0x9db   :  { %555 = vrot.lane.b32.xlu0 %v1758_v36, %s1863_s0 }
 0xa4d   :  { %v556_v39 = vpop.permute.xlu0 %555 }
 0xa4e   :  { %v558_v41 = vmul.f32 %v556_v39, %v553_v37 }
 0xa50   :  { %v2017_v42 = vadd.f32 %v561_v40, %v558_v41 }
 0xa52   :  { %v569_v43 = vrot.slane %v2017_v42, 6 }
 0xa54   :  { %570 = vrot.lane.b32.xlu1 %v569_v43, %s1863_s0 }
 0xac6   :  { %v571_v44 = vpop.permute.xlu1 %570 }
 0xac7   :  { %1628 = vmatmul.mubr.msk.f32.vlgmr.msra.gmra.mxu1 %vm133_vm4, %v571_v44 }
 0xac8   :  { %1642 = vmatpush3.msra.mxu1 %v1899_v1  ;;  %1649 = vmatprep.mubr.msk.f32.mxu1 %vm1862_vm0, %v1861_v0 }
 0xac9   :  { %1643 = vmatprep.subr.mxu1 %v1861_v0 }
 0xaca   :  { %1644 = vmatpush3.msra.mxu1 %v1901_v2 }
 0xacb   :  { %1645 = vmatprep.subr.mxu1 %v1861_v0 }
 0xacc   :  { %1646 = vmatpush3.msra.mxu1 %v1905_v5 }
 0xacd   :  { %1647 = vmatprep.subr.mxu1 %v1861_v0 }
 0xace   :  { %1648 = vmatpush3.msra.mxu1 %v1912_v7 }
 0xacf   :  { %1663 = vmatprep.subr.bf16.mxu1 %v1861_v0 }
 0xb87   :  { %v640_v18 = vpop.f32.mrf.mxu1 }
 0xb88   :  { %v641_v45 = vadd.f32 %v1942_v9, %v640_v18 }
 0xb89   :  { %v1629_v46 = vpop.f32.mrf.mxu1 }
 0xb8a   :  { %652 = vrot.lane.b32.xlu0 %v641_v45, %s1856_s15  ;;  %v644_v47 = vadd.f32 %v641_v45, %v1945_v16 }
 0xb8c   :  { %v1484_v48 = vmul.f32 -1.442695, %v644_v47 }
 0xb8e   :  { %1759 = vpow2.f32 %v1484_v48 }
 0xb9b   :  { %v1760_v49 = vpop.eup %1759 }
 0xb9c   :  { %v648_v50 = vadd.f32 1.0, %v1760_v49 }
 0xb9e   :  { %1761 = vrcp.f32 %v648_v50 }
 0xbab   :  { %v1762_v51 = vpop.eup %1761 }
 0xbac   :  { %v662_v58 = vsub.f32 1.0, %v1762_v51  ;;  %v669_v60 = vmul.f32 %v1762_v51, %v569_v43 }
 0xbfc   :  { %v653_v52 = vpop.permute.xlu0 %652 }
 0xbfd   :  { %v655_v53 = vmul.f32 %v1762_v51, %v653_v52 }
 0xbff   :  { %657 = vrot.lane.b32.xlu1 %v655_v53, %s1856_s15 }
 0xc71   :  { %v658_v55 = vpop.permute.xlu1 %657 }
 0xc72   :  { %v660_v56 = vadd.f32 %v658_v55, %v1945_v16 }
 0xc74   :  { %1763 = vtanh.f32 %v660_v56 }
 0xc81   :  { %v1764_v57 = vpop.eup %1763 }
 0xc82   :  { %664 = vrot.lane.b32.xlu0 %v1764_v57, %s1863_s0 }
 0xcf4   :  { %v665_v59 = vpop.permute.xlu0 %664 }
 0xcf5   :  { %v667_v61 = vmul.f32 %v665_v59, %v662_v58 }
 0xcf7   :  { %v670_v62 = vadd.f32 %v669_v60, %v667_v61 }
 0xcf9   :  { %672 = vrot.lane.b32.xlu1 %v670_v62, %s1863_s0  ;;  %v774_v17 = vrot.slane %v670_v62, 6 }
 0xd6b   :  { %v673_v63 = vpop.permute.xlu1 %672 }
 0xd6c   :  { %675 = vst.msk [vmem:[#allocation2 + $0x6] sm:$0x3] %vm237_vm3, %v673_v63  ;;  %1639 = vmatmul.mubr.msk.f32.vlgmr.msra.gmra.mxu0 %vm133_vm4, %v673_v63 }
 0xd6d   :  { %1653 = vmatpush3.msra.mxu0 %v1899_v1  ;;  %1660 = vmatprep.mubr.msk.f32.mxu0 %vm1862_vm0, %v1861_v0 }
 0xd6e   :  { %1654 = vmatprep.subr.mxu0 %v1861_v0 }
 0xd6f   :  { %1655 = vmatpush3.msra.mxu0 %v1901_v2 }
 0xd70   :  { %1656 = vmatprep.subr.mxu0 %v1861_v0 }
 0xd71   :  { %1657 = vmatpush3.msra.mxu0 %v1905_v5 }
 0xd72   :  { %1658 = vmatprep.subr.mxu0 %v1861_v0 }
 0xd73   :  { %1659 = vmatpush3.msra.mxu0 %v1912_v7 }
 0xd74   :  { %1671 = vmatprep.subr.bf16.mxu0 %v1861_v0 }
 0xe2c   :  { %v744_v3 = vpop.f32.mrf.mxu0 }
 0xe2d   :  { %v745_v1 = vadd.f32 %v1942_v9, %v744_v3 }
 0xe2e   :  { %v1640_v4 = vpop.f32.mrf.mxu0 }
 0xe2f   :  { %v749_v6 = vrot.slane %v745_v1, 6 }
 0xe31   :  { %758 = vrot.lane.b32.xlu0 %v749_v6, %s1856_s15  ;;  %v751_v8 = vadd.f32 %v749_v6, %v1945_v16 }
 0xe33   :  { %v1486_v2 = vmul.f32 -1.442695, %v751_v8 }
 0xe35   :  { %1765 = vpow2.f32 %v1486_v2 }
 0xe42   :  { %v1766_v10 = vpop.eup %1765 }
 0xe43   :  { %v755_v11 = vadd.f32 1.0, %v1766_v10 }
 0xe45   :  { %1767 = vrcp.f32 %v755_v11 }
 0xe52   :  { %v1768_v5 = vpop.eup %1767 }
 0xe53   :  { %v768_v19 = vsub.f32 1.0, %v1768_v5  ;;  %v776_v22 = vmul.f32 %v1768_v5, %v774_v17  ;;  %v1491_v17 = vld [vmem:[#allocation6 + $0x22] ss:$0 sm:$0xff] }
 0xea3   :  { %v759_v12 = vpop.permute.xlu0 %758 }
 0xea4   :  { %v761_v13 = vmul.f32 %v1768_v5, %v759_v12  ;;  %v53_v12 = vld [vmem:[#allocation3 + $0x28] sm:$0x3] }
 0xea6   :  { %763 = vrot.lane.b32.xlu1 %v761_v13, %s1856_s15 }
 0xf18   :  { %v764_v7 = vpop.permute.xlu1 %763 }
 0xf19   :  { %v766_v14 = vadd.f32 %v764_v7, %v1945_v16 }
 0xf1b   :  { %1769 = vtanh.f32 %v766_v14  ;;  %v2100_v14 = vsel %vm84_vm1, %v53_v12, 0 }
 0xf28   :  { %v1770_v15 = vpop.eup %1769 }
 0xf29   :  { %770 = vrot.lane.b32.xlu0 %v1770_v15, %s1863_s0 }
 0xf9b   :  { %v771_v21 = vpop.permute.xlu0 %770 }
 0xf9c   :  { %v773_v23 = vmul.f32 %v771_v21, %v768_v19 }
 0xf9e   :  { %v2057_v24 = vadd.f32 %v776_v22, %v773_v23 }
 0xfa0   :  { %v783_v25 = vrot.slane %v2057_v24, 2  ;;  %v884_v43 = vrot.slane %v2057_v24, 6 }
 0xfa2   :  { %784 = vrot.lane.b32.xlu1 %v783_v25, %s1863_s0 }
0x1014   :  { %v785_v26 = vpop.permute.xlu1 %784 }
0x1015   :  { %1650 = vmatmul.mubr.msk.f32.vlgmr.msra.gmra.mxu1 %vm133_vm4, %v785_v26 }
0x1016   :  { %1667 = vmatprep.mubr.msk.bf16.mxu1 %vm1862_vm0, %v1861_v0 }
0x10d5   :  { %v854_v27 = vpop.f32.mrf.mxu1 }
0x10d6   :  { %v855_v28 = vadd.f32 %v1942_v9, %v854_v27  ;;  %v1730_v27 = vld [vmem:[#allocation3 + $0x48] sm:$0xff]  }
0x10d7   :  { %v1651_v29 = vpop.f32.mrf.mxu1 }
0x10d8   :  { %v859_v30 = vrot.slane %v855_v28, 4  ;;  %v1731_v29 = vld [vmem:[#allocation3 + $0x20] sm:$0xff]  }
0x10da   :  { %868 = vrot.lane.b32.xlu0 %v859_v30, %s1856_s15  ;;  %v861_v31 = vadd.f32 %v859_v30, %v1945_v16  ;;  %v1732_v30 = vld [vmem:[#allocation3 + $0x18] sm:$0xff]  }
0x10dc   :  { %v1488_v32 = vmul.f32 -1.442695, %v861_v31 }
0x10de   :  { %1771 = vpow2.f32 %v1488_v32 }
0x10eb   :  { %v1772_v33 = vpop.eup %1771 }
0x10ec   :  { %v865_v34 = vadd.f32 1.0, %v1772_v33 }
0x10ee   :  { %1773 = vrcp.f32 %v865_v34 }
0x10fb   :  { %v1774_v35 = vpop.eup %1773 }
0x10fc   :  { %v878_v41 = vsub.f32 1.0, %v1774_v35  ;;  %v886_v18 = vmul.f32 %v1774_v35, %v884_v43 }
0x114c   :  { %v869_v36 = vpop.permute.xlu0 %868 }
0x114d   :  { %v871_v37 = vmul.f32 %v1774_v35, %v869_v36 }
0x114f   :  { %873 = vrot.lane.b32.xlu1 %v871_v37, %s1856_s15 }
0x11c1   :  { %v874_v38 = vpop.permute.xlu1 %873 }
0x11c2   :  { %v876_v39 = vadd.f32 %v874_v38, %v1945_v16 }
0x11c4   :  { %1775 = vtanh.f32 %v876_v39 }
0x11d1   :  { %v1776_v40 = vpop.eup %1775 }
0x11d2   :  { %880 = vrot.lane.b32.xlu0 %v1776_v40, %s1863_s0 }
0x1244   :  { %v881_v44 = vpop.permute.xlu0 %880 }
0x1245   :  { %v883_v45 = vmul.f32 %v881_v44, %v878_v41 }
0x1247   :  { %v887_v46 = vadd.f32 %v886_v18, %v883_v45 }
0x1249   :  { %v893_v47 = vrot.slane %v887_v46, 4  ;;  %v994_v4 = vrot.slane %v887_v46, 6 }
0x124b   :  { %894 = vrot.lane.b32.xlu1 %v893_v47, %s1863_s0 }
0x12bd   :  { %v895_v48 = vpop.permute.xlu1 %894 }
0x12be   :  { %1661 = vmatmul.mubr.msk.f32.vlgmr.msra.gmra.mxu0 %vm133_vm4, %v895_v48 }
0x12bf   :  { %1673 = vmatprep.mubr.msk.bf16.mxu0 %vm1862_vm0, %v1861_v0 }
0x137e   :  { %v964_v49 = vpop.f32.mrf.mxu0 }
0x137f   :  { %v965_v50 = vadd.f32 %v1942_v9, %v964_v49 }
0x1380   :  { %v1662_v51 = vpop.f32.mrf.mxu0 }
0x1381   :  { %v969_v52 = vrot.slane %v965_v50, 2 }
0x1383   :  { %978 = vrot.lane.b32.xlu0 %v969_v52, %s1856_s15  ;;  %v971_v53 = vadd.f32 %v969_v52, %v1945_v16 }
0x1385   :  { %v1490_v55 = vmul.f32 -1.442695, %v971_v53 }
0x1387   :  { %1777 = vpow2.f32 %v1490_v55 }
0x1394   :  { %v1778_v56 = vpop.eup %1777 }
0x1395   :  { %v975_v57 = vadd.f32 1.0, %v1778_v56 }
0x1397   :  { %1779 = vrcp.f32 %v975_v57 }
0x13a4   :  { %v1780_v58 = vpop.eup %1779 }
0x13a5   :  { %v988_v1 = vsub.f32 1.0, %v1780_v58  ;;  %v996_v8 = vmul.f32 %v1780_v58, %v994_v4 }
0x13f5   :  { %v979_v59 = vpop.permute.xlu0 %978 }
0x13f6   :  { %v981_v60 = vmul.f32 %v1780_v58, %v979_v59 }
0x13f8   :  { %983 = vrot.lane.b32.xlu1 %v981_v60, %s1856_s15 }
0x13fc   :  { %342 = vrot.lane.b32.xlu1 %v1973_v54, %s1863_s0 }
0x1400   :  { %564 = vrot.lane.b32.xlu1 %v2017_v42, %s1863_s0  ;;  %v1729_v42 = vld [vmem:[#allocation3 + $0x8] sm:$0xff]  }
0x1404   :  { %889 = vrot.lane.b32.xlu1 %v887_v46, %s1863_s0 }
0x146a   :  { %v984_v9 = vpop.permute.xlu1 %983 }
0x146b   :  { %v986_v61 = vadd.f32 %v984_v9, %v1945_v16  ;;  %v1728_v16 = vld [vmem:[#allocation3 + $0x10] sm:$0xff]  }
0x146c   :  { %1664 = vmatpush3.bf16.msra.mxu1 %v1728_v16 }
0x146d   :  { %1781 = vtanh.f32 %v986_v61  ;;  %1665 = vmatprep.subr.bf16.mxu1 %v1861_v0 }
0x146e   :  { %v343_v62 = vpop.permute.xlu1 %342 }
0x146f   :  { %346 = vst.msk [vmem:[#allocation2 + $0xa] sm:$0xc] %vm345_vm5, %v343_v62  ;;  %v58_v62 = vld [vmem:[#allocation3 + $0x40] sm:$0x1] }
0x1470   :  { %1666 = vmatpush3.bf16.msra.mxu1 %v1729_v42 }
0x1471   :  { %1685 = vmatprep.subr.bf16.mxu1 %v1861_v0 }
0x1472   :  { %v565_v63 = vpop.permute.xlu1 %564 }
0x1473   :  { %568 = vst.msk [vmem:[#allocation2 + $0x2] sm:$0xc0] %vm567_vm6, %v565_v63 }
0x1476   :  { %v890_v3 = vpop.permute.xlu1 %889 }
0x1477   :  { %892 = vst.msk [vmem:[#allocation2 - $0x2] sm:$0x30] %vm456_vm7, %v890_v3 }
0x147a   :  { %v1782_v54 = vpop.eup %1781 }
0x147b   :  { %990 = vrot.lane.b32.xlu0 %v1782_v54, %s1863_s0 }
0x147f   :  { %453 = vrot.lane.b32.xlu0 %v1995_v20, %s1863_s0 }
0x1483   :  { %779 = vrot.lane.b32.xlu0 %v2057_v24, %s1863_s0 }
0x14ed   :  { %v991_v6 = vpop.permute.xlu0 %990 }
0x14ee   :  { %v993_v2 = vmul.f32 %v991_v6, %v988_v1 }
0x14f0   :  { %v997_v10 = vadd.f32 %v996_v8, %v993_v2 }
0x14f1   :  { %v454_v11 = vpop.permute.xlu0 %453 }
0x14f2   :  { %457 = vst.msk [vmem:[#allocation2 + $0x6] sm:$0x30] %vm456_vm7, %v454_v11  ;;  %999 = vrot.lane.b32.xlu0 %v997_v10, %s1863_s0 }
0x14f5   :  { %v780_v20 = vpop.permute.xlu0 %779 }
0x14f6   :  { %782 = vst.msk [vmem:[#allocation2 + $0x2] sm:$0xc] %vm345_vm5, %v780_v20 }
0x14f9   :  { %v1004_v7 = vld [vmem:[#allocation2 + $0x8] sm:$0xff] }
0x1564   :  { %v1000_v5 = vpop.permute.xlu0 %999 }
0x1565   :  { %1002 = vst.msk [vmem:[#allocation2 - $0x6] sm:$0xc0] %vm567_vm6, %v1000_v5 }
0x156c   :  { %v1003_v13 = vld [vmem:[#allocation2] sm:$0xff] }
0x156d   :  { %v1005_v15 = vpack.c.bf16 %v1004_v7, %v1003_v13  ;;  %v1733_v13 = vld [vmem:[#allocation3 + $0x38] sm:$0xff]   ;;  %v1734_v7 = vld [vmem:[#allocation3 + $0x30] sm:$0xff]  }
0x156f   :  { %1668 = vmatmul.mubr.msk.bf16.vlgmr.msra.gmra.mxu1 %vm133_vm4, %v1005_v15 }
0x1570   :  { %1686 = vmatpush3.bf16.msra.mxu1 %v2100_v14  ;;  %1687 = vmatprep.mubr.msk.bf16.mxu1 %vm1862_vm0, %v1861_v0 }
0x1571   :  { %1697 = vmatprep.subr.bf16.mxu1 %v1861_v0 }
0x162f   :  { %v1059_v19 = vpop.f32.mrf.mxu1 }
0x1630   :  { %v1060_v21 = vadd.f32 %v1491_v17, %v1059_v19 }
0x1631   :  { %v1669_v22 = vpop.f32.mrf.mxu1 }
0x1632   :  { %v1066_v23 = vpack.c.bf16 %v1060_v21, %v1060_v21  ;;  %1123 = vrot.lane.b32.xlu1 %v1060_v21, %s1863_s0 }
0x1633   :  { %v1062_v24 = vpop.f32.mrf.mxu1 }
0x1634   :  { %v1063_v25 = vadd.f32 %v1491_v17, %v1062_v24  ;;  %v1078_v26 = vsel %vm1076_vm8, %v1066_v23, 0 }
0x1635   :  { %v1670_v28 = vpop.f32.mrf.mxu1  ;;  %1672 = vmatpush3.bf16.msra.mxu0 %v1078_v26 }
0x1636   :  { %1125 = vrot.lane.b32.xlu0 %v1063_v25, %s1863_s0  ;;  %1677 = vmatprep.subr.bf16.mxu0 %v1861_v0 }
0x1638   :  { %1674 = vmatmul.mubr.msk.bf16.vlgmr.msra.gmra.mxu0 %vm1072_vm9, %v1730_v27  ;;  %v1504_v27 = vld [vmem:[#allocation6 + $0x23] ss:$0 sm:$0xff] }
0x1639   :  { %1681 = vmatprep.mubr.msk.bf16.mxu0 %vm1862_vm0, %v1861_v0  ;;  %1678 = vmatpush3.bf16.msra.mxu0 %v1731_v29 }
0x163a   :  { %1679 = vmatprep.subr.bf16.mxu0 %v1861_v0 }
0x163d   :  { %1680 = vmatpush3.bf16.msra.mxu0 %v1732_v30 }
0x163e   :  { %1691 = vmatprep.subr.bf16.mxu0 %v1861_v0 }
0x16a4   :  { %v1124_v33 = vpop.permute.xlu1 %1123 }
0x16a8   :  { %v1126_v34 = vpop.permute.xlu0 %1125 }
0x16f8   :  { %v1114_v31 = vpop.f32.mrf.mxu0 }
0x16f9   :  { %v1129_v36 = vmul.f32 %v1124_v33, %v1114_v31 }
0x16fa   :  { %v1675_v32 = vpop.f32.mrf.mxu0 }
0x16fc   :  { %v1117_v35 = vpop.f32.mrf.mxu0 }
0x16fd   :  { %v1130_v37 = vmul.f32 %v1126_v34, %v1117_v35 }
0x16fe   :  { %v1676_v38 = vpop.f32.mrf.mxu0 }
0x16ff   :  { %v1131_v39 = vpack.c.bf16 %v1130_v37, %v1129_v36 }
0x1701   :  { %1682 = vmatmul.mubr.msk.bf16.vlgmr.msra.gmra.mxu0 %vm133_vm4, %v1131_v39 }
0x1702   :  { %1693 = vmatprep.mubr.msk.bf16.mxu0 %vm1862_vm0, %v1861_v0 }
0x17c1   :  { %v1181_v40 = vpop.f32.mrf.mxu0 }
0x17c2   :  { %v1188_v41 = vsel %vm80_vm2, %v1181_v40, -inf }
0x17c3   :  { %1189 = vmax.xlane.f32.xlu1 %v1188_v41  ;;  %v1683_v43 = vpop.f32.mrf.mxu0 }
0x17c5   :  { %v1184_v44 = vpop.f32.mrf.mxu0 }
0x17c6   :  { %v1191_v18 = vsel %vm80_vm2, %v1184_v44, -inf }
0x17c7   :  { %1192 = vmax.xlane.f32.xlu0 %v1191_v18  ;;  %v1684_v45 = vpop.f32.mrf.mxu0 }
0x17d4   :  { %1257 = vrot.lane.b32.xlu1 %v1063_v25, %s1856_s15 }
0x17dd   :  { %1255 = vrot.lane.b32.xlu0 %v1060_v21, %s1856_s15 }
0x184c   :  { %v1190_v46 = vpop.xlane.xlu1 %1189 }
0x1850   :  { %v1193_v47 = vpop.xlane.xlu0 %1192  ;;  %v1258_v54 = vpop.permute.xlu1 %1257 }
0x1851   :  { %v1194_v48 = vmax.f32 %v1190_v46, %v1193_v47 }
0x1853   :  { %v1195_v49 = vrot.slane %v1194_v48, 4 }
0x1854   :  { %v1256_v16 = vpop.permute.xlu0 %1255 }
0x1855   :  { %v1196_v50 = vmax.f32 %v1194_v48, %v1195_v49 }
0x1857   :  { %v1197_v51 = vrot.slane %v1196_v50, 2 }
0x1859   :  { %v1198_v52 = vmax.f32 %v1196_v50, %v1197_v51 }
0x185b   :  { %v1199_v53 = vrot.slane %v1198_v52, 1 }
0x185d   :  { %v1200_v55 = vmax.f32 %v1198_v52, %v1199_v53 }
0x185f   :  { %v1201_v56 = vsub.f32 %v1181_v40, %v1200_v55  ;;  %v1202_v57 = vsub.f32 %v1184_v44, %v1200_v55 }
0x1861   :  { %v1203_v58 = vmul.f32 1.442695, %v1201_v56  ;;  %v1205_v59 = vmul.f32 1.442695, %v1202_v57 }
0x1863   :  { %1783 = vpow2.f32 %v1203_v58 }
0x1864   :  { %1785 = vpow2.f32 %v1205_v59 }
0x1870   :  { %v1784_v60 = vpop.eup %1783 }
0x1871   :  { %v1786_v9 = vpop.eup %1785 }
0x1872   :  { %v1207_v61 = vpack.c.bf16 %v1786_v9, %v1784_v60 }
0x1874   :  { %1688 = vmatmul.mubr.msk.bf16.vlgmr.msra.gmra.mxu1 %vm80_vm2, %v1207_v61 }
0x1875   :  { %1698 = vmatpush3.bf16.msra.mxu1 %v1207_v61  ;;  %1699 = vmatprep.mubr.msk.bf16.mxu1 %vm1862_vm0, %v1861_v0 }
0x1876   :  { %1709 = vmatprep.subr.bf16.mxu1 %v1861_v0 }
0x187c   :  { %1700 = vmatmul.mubr.msk.bf16.vlgmr.msra.gmra.mxu1 %vm1264_vm10, %v58_v62 }
0x187d   :  { %1713 = vmatprep.mubr.msk.bf16.mxu1 %vm1862_vm0, %v1861_v0  ;;  %1710 = vmatpush3.bf16.msra.mxu1 %v1733_v13 }
0x187e   :  { %1711 = vmatprep.subr.bf16.mxu1 %v1861_v0 }
0x1881   :  { %1712 = vmatpush3.bf16.msra.mxu1 %v1734_v7 }
0x1934   :  { %v1248_v63 = vpop.f32.mrf.mxu1 }
0x1935   :  { %v1261_v1 = vmul.f32 %v1256_v16, %v1248_v63 }
0x1936   :  { %v1689_v3 = vpop.f32.mrf.mxu1 }
0x1938   :  { %v1251_v42 = vpop.f32.mrf.mxu1 }
0x1939   :  { %v1262_v4 = vmul.f32 %v1258_v54, %v1251_v42 }
0x193a   :  { %v1690_v6 = vpop.f32.mrf.mxu1 }
0x193b   :  { %v1263_v8 = vpack.c.bf16 %v1262_v4, %v1261_v1 }
0x193c   :  { %v1342_v2 = vpop.f32.mrf.mxu1 }
0x193d   :  { %1787 = vrcp.f32 %v1342_v2  ;;  %1692 = vmatpush3.bf16.msra.mxu0 %v1263_v8 }
0x193e   :  { %v1701_v10 = vpop.f32.mrf.mxu1  ;;  %1703 = vmatprep.subr.bf16.mxu0 %v1861_v0 }
0x1940   :  { %1694 = vmatmul.mubr.msk.bf16.vlgmr.msra.gmra.mxu0 %vm1264_vm10, %v58_v62  ;;  %v1345_v11 = vpop.f32.mrf.mxu1 }
0x1941   :  { %1704 = vmatpush3.bf16.msra.mxu0 %v2100_v14  ;;  %1705 = vmatprep.mubr.msk.bf16.mxu0 %vm1862_vm0, %v1861_v0 }
0x1942   :  { %v1702_v20 = vpop.f32.mrf.mxu1 }
0x194a   :  { %v1788_v5 = vpop.eup %1787 }
0x194b   :  { %v1349_v12 = vpack.c.bf16 %v1788_v5, %v1788_v5 }
0x194d   :  { %1706 = vmatmul.mubr.msk.bf16.vlgmr.msra.gmra.mxu0 %vm80_vm2, %v1349_v12 }
0x1a00   :  { %v1302_v15 = vpop.f32.mrf.mxu0 }
0x1a02   :  { %v1695_v17 = vpop.f32.mrf.mxu0 }
0x1a04   :  { %v1305_v19 = vpop.f32.mrf.mxu0 }
0x1a06   :  { %v1696_v21 = vpop.f32.mrf.mxu0 }
0x1a0d   :  { %v1387_v22 = vpop.f32.mrf.mxu0 }
0x1a0e   :  { %v1393_v14 = vmul.f32 %v1387_v22, %v1302_v15 }
0x1a0f   :  { %v1707_v23 = vpop.f32.mrf.mxu0 }
0x1a10   :  { %v1394_v24 = vpack.c.bf16 %v1393_v14, %v1393_v14 }
0x1a11   :  { %v1390_v25 = vpop.f32.mrf.mxu0 }
0x1a12   :  { %1714 = vmatmul.mubr.msk.bf16.vlgmr.msra.gmra.mxu1 %vm133_vm4, %v1394_v24 }
0x1a13   :  { %v1708_v26 = vpop.f32.mrf.mxu0 }
0x1ad2   :  { %v1448_v28 = vpop.f32.mrf.mxu1 }
0x1ad3   :  { %v1449_v0 = vadd.f32 %v1504_v27, %v1448_v28 }
0x1ad4   :  { %v1715_v29 = vpop.f32.mrf.mxu1 }
0x1ad5   :  { %1455 = vst.msk [vmem:[#allocation8] sm:$0x3] %vm1454_vm11, %v1449_v0 }
0x1ad6   :  { %v1451_v30 = vpop.f32.mrf.mxu1 }
0x1ad7   :  { %1840 = shalt.err (!%p1837_p0)
}
0x1ad8   :  { %1465 = dma.vmem_to_hbm [thread:$0]  %s1463_s27, 32, %s2142_s3, [#allocation5]   ;;  %v1716_v31 = vpop.f32.mrf.mxu1 }
0x1ad9   :  { %1853 = dma.done.wait [#allocation5], 32  }
0x1ada   :  { %1854 = vsyncadd [#allocation5], 4294967264 }
0x1adb   :  { %1469 = vsyncpa [#allocation4], 1 }
0x1adc   :  { %1470 = vsyncpa [#allocation7], 1 }
0x1add   :  { %1471 = vsyncpa [#allocation5], 1 }

</bundles_post_ra>
